<compile_context>
chip_gen: v7x
topology: tpu7x:2x2x1
jax: 0.10.0
libtpu: 0.0.40
codegen_flags: <defaults>
</compile_context>

<pallas_src>
import functools

import jax
import jax.numpy as jnp
from jax import lax
from jax.experimental import pallas as pl
from jax.experimental.pallas import tpu as pltpu


# ----------------------------------------------------------------------------
# Fused kernel: embedding -> RK4(GAT ODE) -> tanh -> pool -> readout MLP
# ----------------------------------------------------------------------------
def make_fused_kernel(N, D, B, epsilon, iterations, gat_slope=0.2, mlp_slope=0.01):
    def kernel(x_ref, adj_ref, assign_ref, assign_t_ref,
               w_emb_ref, b_emb_ref, w_gat_ref, a_src_ref, a_dst_ref, gat_b_ref,
               w1_ref, b1_ref, w2_ref, b2_ref, alpha_ref, out_ref):
        # ---- loop-invariant loads / hoisted work ----------------------------
        alpha = alpha_ref[0, 0]                              # sigmoid(alpha_train), SMEM scalar
        adj_mask = adj_ref[...] > 0                          # [N, N] bool, adj[dst, src] (bf16 in)
        w_gat_bf = w_gat_ref[...]                            # [D, D] bf16 (cast at boundary)
        a_src = a_src_ref[...]                               # [1, D] f32
        a_dst = a_dst_ref[...]                               # [1, D] f32
        gat_b_full = jnp.broadcast_to(gat_b_ref[...], (N, D))  # hoisted broadcast (no CSE in loop)
        neg = jnp.float32(-1e30)
        dt = jnp.float32(epsilon)

        # ---- self.emb --------------------------------------------------------
        x = jnp.dot(x_ref[...], w_emb_ref[...],
                    preferred_element_type=jnp.float32) + b_emb_ref[...]       # [N, D]

        # ---- PyG GATConv (heads=1, leaky_relu slope 0.2, bias) ---------------
        def gat(z):
            h = jnp.dot(z.astype(jnp.bfloat16), w_gat_bf,
                        preferred_element_type=jnp.float32)                    # [N, D] f32 acc
            # s_dst[i] = att_dst . h[i]   (varies along dst rows)
            s_dst = lax.dot_general(h, a_dst, (((1,), (1,)), ((), ())),
                                    preferred_element_type=jnp.float32)        # [N, 1]
            # s_src[j] = att_src . h[j]   (single row-vector matvec, broadcasts over rows)
            s_src = lax.dot_general(a_src, h, (((1,), (1,)), ((), ())),
                                    preferred_element_type=jnp.float32)        # [1, N]
            logits = s_dst + s_src                                             # [N(dst), N(src)]
            logits = jnp.where(logits > 0, logits, gat_slope * logits)         # LeakyReLU(0.2)
            masked = jnp.where(adj_mask, logits, neg)
            m = jnp.max(masked, axis=-1, keepdims=True)                        # [N, 1]
            e = jnp.where(adj_mask, jnp.exp(masked - m), 0.0)                  # [N, N]
            denom = jnp.maximum(jnp.sum(e, axis=-1, keepdims=True), 1e-20)
            attn = e * pl.reciprocal(denom, approx=True)                       # softmax over src
            agg = jnp.dot(attn.astype(jnp.bfloat16), h.astype(jnp.bfloat16),
                          preferred_element_type=jnp.float32)                  # [N, D]
            return agg + gat_b_full

        # AttentionLaplacianODEFunc (add_source=False, no_alpha_sigmoid=False)
        def f(z):
            return alpha * (gat(z) - z)

        # ---- fixed-step RK4 over t_span (f is time-independent) -------------
        def rk4_step(_, z):
            k1 = f(z)
            k2 = f(z + (0.5 * dt) * k1)
            k3 = f(z + (0.5 * dt) * k2)
            k4 = f(z + dt * k3)
            return z + (dt / 6.0) * (k1 + 2.0 * (k2 + k3) + k4)

        x = lax.fori_loop(0, iterations, rk4_step, x, unroll=(iterations <= 4))
        x = jnp.tanh(x)                                                        # [N, D]

        # ---- add/max/mean graph pooling + readout MLP (fused epilogue) ------
        assign = assign_ref[...]            # [B, N] one-hot graph membership
        assign_t = assign_t_ref[...]        # [N, B]
        sum_pool = jnp.dot(assign, x, preferred_element_type=jnp.float32)      # [B, D]
        counts = jnp.sum(assign, axis=-1, keepdims=True)                       # [B, 1]
        mean_pool = sum_pool * pl.reciprocal(jnp.maximum(counts, 1.0), approx=True)

        max_rows = []
        for b in range(B):                  # B is small & static
            mask_col = assign_t[:, b:b + 1] > 0                                # [N, 1]
            max_rows.append(jnp.max(jnp.where(mask_col, x, neg),
                                    axis=0, keepdims=True))                    # [1, D]
        max_pool = jnp.concatenate(max_rows, axis=0)                           # [B, D]
        max_pool = jnp.where(counts > 0, max_pool, 0.0)                        # empty-graph guard

        pooled = jnp.concatenate([sum_pool, max_pool, mean_pool], axis=1)      # [B, 3D]
        h1 = jnp.dot(pooled, w1_ref[...], preferred_element_type=jnp.float32) + b1_ref[...]
        h1 = jnp.where(h1 > 0, h1, mlp_slope * h1)                             # LeakyReLU(0.01)
        h2 = jnp.dot(h1, w2_ref[...], preferred_element_type=jnp.float32) + b2_ref[...]
        out_ref[...] = jnp.where(h2 > 0, h2, mlp_slope * h2)

    return kernel


# ----------------------------------------------------------------------------
# Wrapper
# ----------------------------------------------------------------------------
@functools.partial(jax.jit, static_argnames=("epsilon", "iterations"))
def grand_graph_prop_forward(x, adj, assign, params, *, epsilon, iterations):
    N, input_dim = x.shape
    D = params["w_emb"].shape[1]
    B = assign.shape[0]
    out_dim = params["w2"].shape[1]

    vmem = pl.BlockSpec(memory_space=pltpu.MemorySpace.VMEM)
    smem = pl.BlockSpec(memory_space=pltpu.MemorySpace.SMEM)

    kernel = make_fused_kernel(N, D, B, epsilon, iterations)

    # Operands (order must match the kernel signature). adj / w_gat cast to bf16
    # at the boundary: halves the O(N^2) VMEM footprint and feeds bf16 MXU paths.
    args = (x, adj.astype(jnp.bfloat16), assign, assign.T,
            params["w_emb"], params["b_emb"],
            params["w_gat"].astype(jnp.bfloat16),
            params["a_src"], params["a_dst"], params["gat_b"],
            params["w1"], params["b1"], params["w2"], params["b2"],
            params["alpha"])

    # Advisory cost estimate (dominant terms of the 4*iterations f() calls).
    n_f = iterations * 4
    flops = int(n_f * (2 * N * D * D + 2 * N * N * D + 4 * N * D + 8 * N * N)
                + 2 * N * input_dim * D + 2 * B * N * D
                + 2 * B * (3 * D) * (3 * D // 2) + 2 * B * (3 * D // 2) * out_dim)
    transcendentals = int(n_f * (N * N + N) + N * D + B)
    bytes_accessed = int(sum(a.size * a.dtype.itemsize for a in args) + B * out_dim * 4)

    out = pl.pallas_call(
        kernel,
        out_shape=jax.ShapeDtypeStruct((B, out_dim), jnp.float32),
        in_specs=[vmem] * 14 + [smem],
        out_specs=vmem,
        compiler_params=pltpu.CompilerParams(vmem_limit_bytes=64 * 1024 * 1024),
        cost_estimate=pl.CostEstimate(flops=flops,
                                      transcendentals=transcendentals,
                                      bytes_accessed=bytes_accessed),
    )(*args)
    return out


# ----------------------------------------------------------------------------
# Main
# ----------------------------------------------------------------------------
if __name__ == "__main__":
    # Small shapes consistent with the module.
    input_dim = 8
    hidden_dim = 32          # D
    output_dim = 4
    epsilon = 0.1
    iterations = 2
    B = 2                    # graphs
    nodes_per_graph = 8
    N = B * nodes_per_graph  # 16 nodes total
    D = hidden_dim

    key = jax.random.PRNGKey(0)
    keys = jax.random.split(key, 10)

    # Node features.
    x = jax.random.normal(keys[0], (N, input_dim), dtype=jnp.float32)

    # Edge index: bidirectional ring within each graph -> dense adjacency adj[dst, src].
    src, dst = [], []
    for g in range(B):
        base = g * nodes_per_graph
        for i in range(nodes_per_graph):
            j = (i + 1) % nodes_per_graph
            src += [base + i, base + j]
            dst += [base + j, base + i]
    adj = jnp.zeros((N, N), jnp.float32)
    adj = adj.at[jnp.array(dst), jnp.array(src)].set(1.0)
    # GATConv(add_self_loops=True)
    adj = adj.at[jnp.arange(N), jnp.arange(N)].set(1.0)

    # batch vector -> one-hot assignment [B, N]
    batch = jnp.arange(N) // nodes_per_graph
    assign = (batch[None, :] == jnp.arange(B)[:, None]).astype(jnp.float32)

    # Deterministic parameter init (weights stored as [in, out]).
    scale = 0.1
    params = {
        "w_emb": scale * jax.random.normal(keys[1], (input_dim, D), jnp.float32),
        "b_emb": scale * jax.random.normal(keys[2], (1, D), jnp.float32),
        "w_gat": scale * jax.random.normal(keys[3], (D, D), jnp.float32),
        "a_src": scale * jax.random.normal(keys[4], (1, D), jnp.float32),
        "a_dst": scale * jax.random.normal(keys[5], (1, D), jnp.float32),
        "gat_b": scale * jax.random.normal(keys[6], (1, D), jnp.float32),
        # alpha_train initialized to 0.0 in the module -> sigmoid(0.0) = 0.5
        "alpha": jnp.full((1, 1), jax.nn.sigmoid(0.0), dtype=jnp.float32),
        # readout: Linear(3D, 3D//2) -> LeakyReLU -> Linear(3D//2, output_dim) -> LeakyReLU
        "w1": scale * jax.random.normal(keys[7], (3 * D, 3 * D // 2), jnp.float32),
        "b1": scale * jax.random.normal(keys[8], (1, 3 * D // 2), jnp.float32),
        "w2": scale * jax.random.normal(keys[9], (3 * D // 2, output_dim), jnp.float32),
        "b2": jnp.zeros((1, output_dim), jnp.float32),
    }

    out = grand_graph_prop_forward(x, adj, assign, params,
                                   epsilon=epsilon, iterations=iterations)
    out = jax.block_until_ready(out)

    assert out.shape == (B, output_dim)
    assert bool(jnp.all(jnp.isfinite(out)))
    print("KERNEL_OK")
</pallas_src>

<mosaic_0001>
module attributes {stable_mosaic.version = 11 : i64} {
  func.func @kernel(%arg0: memref<16x8xf32, #tpu.memory_space<vmem>>, %arg1: memref<16x16xbf16, #tpu.memory_space<vmem>>, %arg2: memref<2x16xf32, #tpu.memory_space<vmem>>, %arg3: memref<16x2xf32, #tpu.memory_space<vmem>>, %arg4: memref<8x32xf32, #tpu.memory_space<vmem>>, %arg5: memref<1x32xf32, #tpu.memory_space<vmem>>, %arg6: memref<32x32xbf16, #tpu.memory_space<vmem>>, %arg7: memref<1x32xf32, #tpu.memory_space<vmem>>, %arg8: memref<1x32xf32, #tpu.memory_space<vmem>>, %arg9: memref<1x32xf32, #tpu.memory_space<vmem>>, %arg10: memref<96x48xf32, #tpu.memory_space<vmem>>, %arg11: memref<1x48xf32, #tpu.memory_space<vmem>>, %arg12: memref<48x4xf32, #tpu.memory_space<vmem>>, %arg13: memref<1x4xf32, #tpu.memory_space<vmem>>, %arg14: memref<1x1xf32, #tpu.memory_space<smem>>, %arg15: memref<2x4xf32, #tpu.memory_space<vmem>>) attributes {dimension_semantics = [], scalar_prefetch = 0 : i64, scratch_operands = 0 : i64, tpu.core_type = #tpu.core_type<tc>} {
    %c0 = arith.constant 0 : index
    %c0_0 = arith.constant 0 : index
    %0 = memref.load %arg14[%c0, %c0_0] : memref<1x1xf32, #tpu.memory_space<smem>>
    %c0_1 = arith.constant 0 : index
    %c0_2 = arith.constant 0 : index
    %1 = vector.load %arg1[%c0_1, %c0_2] : memref<16x16xbf16, #tpu.memory_space<vmem>>, vector<16x16xbf16>
    %cst = arith.constant 0.000000e+00 : bf16
    %2 = vector.broadcast %cst : bf16 to vector<16x16xbf16>
    %3 = arith.cmpf ogt, %1, %2 : vector<16x16xbf16>
    %c0_3 = arith.constant 0 : index
    %c0_4 = arith.constant 0 : index
    %4 = vector.load %arg6[%c0_3, %c0_4] : memref<32x32xbf16, #tpu.memory_space<vmem>>, vector<32x32xbf16>
    %c0_5 = arith.constant 0 : index
    %c0_6 = arith.constant 0 : index
    %5 = vector.load %arg7[%c0_5, %c0_6] : memref<1x32xf32, #tpu.memory_space<vmem>>, vector<1x32xf32>
    %c0_7 = arith.constant 0 : index
    %c0_8 = arith.constant 0 : index
    %6 = vector.load %arg8[%c0_7, %c0_8] : memref<1x32xf32, #tpu.memory_space<vmem>>, vector<1x32xf32>
    %c0_9 = arith.constant 0 : index
    %c0_10 = arith.constant 0 : index
    %7 = vector.load %arg9[%c0_9, %c0_10] : memref<1x32xf32, #tpu.memory_space<vmem>>, vector<1x32xf32>
    %8 = vector.shape_cast %7 : vector<1x32xf32> to vector<1x32xf32>
    %9 = vector.broadcast %8 : vector<1x32xf32> to vector<16x32xf32>
    %c0_11 = arith.constant 0 : index
    %c0_12 = arith.constant 0 : index
    %10 = vector.load %arg0[%c0_11, %c0_12] : memref<16x8xf32, #tpu.memory_space<vmem>>, vector<16x8xf32>
    %c0_13 = arith.constant 0 : index
    %c0_14 = arith.constant 0 : index
    %11 = vector.load %arg4[%c0_13, %c0_14] : memref<8x32xf32, #tpu.memory_space<vmem>>, vector<8x32xf32>
    %cst_15 = arith.constant dense<0.000000e+00> : vector<16x32xf32>
    %12 = tpu.matmul %10, %11, %cst_15 {dimension_numbers = #tpu.dot_dimension_numbers<[1], [0], [0], [1], [0, 0, 1, 1], [], []>} : vector<16x8xf32>, vector<8x32xf32>, vector<16x32xf32> -> vector<16x32xf32>
    %c0_16 = arith.constant 0 : index
    %c0_17 = arith.constant 0 : index
    %13 = vector.load %arg5[%c0_16, %c0_17] : memref<1x32xf32, #tpu.memory_space<vmem>>, vector<1x32xf32>
    %14 = vector.broadcast %13 : vector<1x32xf32> to vector<16x32xf32>
    %15 = arith.addf %12, %14 : vector<16x32xf32>
    %cst_18 = arith.constant -1.000000e+30 : f32
    %cst_19 = arith.constant 1.000000e-01 : f32
    %c0_i32 = arith.constant 0 : i32
    %16 = arith.truncf %15 : vector<16x32xf32> to vector<16x32xbf16>
    %cst_20 = arith.constant dense<0.000000e+00> : vector<16x32xf32>
    %17 = tpu.matmul %16, %4, %cst_20 {dimension_numbers = #tpu.dot_dimension_numbers<[1], [0], [0], [1], [0, 0, 1, 1], [], []>} : vector<16x32xbf16>, vector<32x32xbf16>, vector<16x32xf32> -> vector<16x32xf32>
    %cst_21 = arith.constant dense<0.000000e+00> : vector<16x1xf32>
    %18 = tpu.matmul %17, %6, %cst_21 {dimension_numbers = #tpu.dot_dimension_numbers<[1], [1], [0], [0], [0, 0, 1, 0], [], []>} : vector<16x32xf32>, vector<1x32xf32>, vector<16x1xf32> -> vector<16x1xf32>
    %cst_22 = arith.constant dense<0.000000e+00> : vector<1x16xf32>
    %19 = tpu.matmul %5, %17, %cst_22 {dimension_numbers = #tpu.dot_dimension_numbers<[1], [1], [0], [0], [0, 0, 1, 0], [], []>} : vector<1x32xf32>, vector<16x32xf32>, vector<1x16xf32> -> vector<1x16xf32>
    %20 = vector.broadcast %18 : vector<16x1xf32> to vector<16x16xf32>
    %21 = vector.broadcast %19 : vector<1x16xf32> to vector<16x16xf32>
    %22 = arith.addf %20, %21 : vector<16x16xf32>
    %cst_23 = arith.constant 0.000000e+00 : f32
    %23 = vector.broadcast %cst_23 : f32 to vector<16x16xf32>
    %24 = arith.cmpf ogt, %22, %23 : vector<16x16xf32>
    %cst_24 = arith.constant 2.000000e-01 : f32
    %25 = vector.broadcast %cst_24 : f32 to vector<16x16xf32>
    %26 = arith.mulf %25, %22 : vector<16x16xf32>
    %27 = arith.select %24, %22, %26 : vector<16x16xi1>, vector<16x16xf32>
    %28 = vector.broadcast %cst_18 : f32 to vector<16x16xf32>
    %29 = arith.select %3, %27, %28 : vector<16x16xi1>, vector<16x16xf32>
    %cst_25 = arith.constant dense<0xFF800000> : vector<16xf32>
    %30 = vector.multi_reduction <maximumf>, %29, %cst_25 [1] : vector<16x16xf32> to vector<16xf32>
    %31 = vector.shape_cast %30 : vector<16xf32> to vector<16x1xf32>
    %32 = vector.broadcast %31 : vector<16x1xf32> to vector<16x16xf32>
    %33 = arith.subf %29, %32 : vector<16x16xf32>
    %34 = math.exp %33 : vector<16x16xf32>
    %cst_26 = arith.constant 0.000000e+00 : f32
    %35 = vector.broadcast %cst_26 : f32 to vector<16x16xf32>
    %36 = arith.select %3, %34, %35 : vector<16x16xi1>, vector<16x16xf32>
    %cst_27 = arith.constant dense<0.000000e+00> : vector<16xf32>
    %37 = vector.multi_reduction <add>, %36, %cst_27 [1] : vector<16x16xf32> to vector<16xf32>
    %38 = vector.shape_cast %37 : vector<16xf32> to vector<16x1xf32>
    %cst_28 = arith.constant 9.99999968E-21 : f32
    %39 = vector.broadcast %cst_28 : f32 to vector<16x1xf32>
    %40 = arith.maximumf %38, %39 : vector<16x1xf32>
    %41 = tpu.reciprocal %40 {approx = true} : vector<16x1xf32> -> vector<16x1xf32>
    %42 = vector.broadcast %41 : vector<16x1xf32> to vector<16x16xf32>
    %43 = arith.mulf %36, %42 : vector<16x16xf32>
    %44 = arith.truncf %43 : vector<16x16xf32> to vector<16x16xbf16>
    %45 = arith.truncf %17 : vector<16x32xf32> to vector<16x32xbf16>
    %cst_29 = arith.constant dense<0.000000e+00> : vector<16x32xf32>
    %46 = tpu.matmul %44, %45, %cst_29 {dimension_numbers = #tpu.dot_dimension_numbers<[1], [0], [0], [1], [0, 0, 1, 1], [], []>} : vector<16x16xbf16>, vector<16x32xbf16>, vector<16x32xf32> -> vector<16x32xf32>
    %47 = arith.addf %46, %9 : vector<16x32xf32>
    %48 = arith.subf %47, %15 : vector<16x32xf32>
    %49 = vector.broadcast %0 : f32 to vector<16x32xf32>
    %50 = arith.mulf %49, %48 : vector<16x32xf32>
    %cst_30 = arith.constant 5.000000e-01 : f32
    %51 = arith.mulf %cst_30, %cst_19 : f32
    %52 = vector.broadcast %51 : f32 to vector<16x32xf32>
    %53 = arith.mulf %52, %50 : vector<16x32xf32>
    %54 = arith.addf %15, %53 : vector<16x32xf32>
    %55 = arith.truncf %54 : vector<16x32xf32> to vector<16x32xbf16>
    %cst_31 = arith.constant dense<0.000000e+00> : vector<16x32xf32>
    %56 = tpu.matmul %55, %4, %cst_31 {dimension_numbers = #tpu.dot_dimension_numbers<[1], [0], [0], [1], [0, 0, 1, 1], [], []>} : vector<16x32xbf16>, vector<32x32xbf16>, vector<16x32xf32> -> vector<16x32xf32>
    %cst_32 = arith.constant dense<0.000000e+00> : vector<16x1xf32>
    %57 = tpu.matmul %56, %6, %cst_32 {dimension_numbers = #tpu.dot_dimension_numbers<[1], [1], [0], [0], [0, 0, 1, 0], [], []>} : vector<16x32xf32>, vector<1x32xf32>, vector<16x1xf32> -> vector<16x1xf32>
    %cst_33 = arith.constant dense<0.000000e+00> : vector<1x16xf32>
    %58 = tpu.matmul %5, %56, %cst_33 {dimension_numbers = #tpu.dot_dimension_numbers<[1], [1], [0], [0], [0, 0, 1, 0], [], []>} : vector<1x32xf32>, vector<16x32xf32>, vector<1x16xf32> -> vector<1x16xf32>
    %59 = vector.broadcast %57 : vector<16x1xf32> to vector<16x16xf32>
    %60 = vector.broadcast %58 : vector<1x16xf32> to vector<16x16xf32>
    %61 = arith.addf %59, %60 : vector<16x16xf32>
    %cst_34 = arith.constant 0.000000e+00 : f32
    %62 = vector.broadcast %cst_34 : f32 to vector<16x16xf32>
    %63 = arith.cmpf ogt, %61, %62 : vector<16x16xf32>
    %cst_35 = arith.constant 2.000000e-01 : f32
    %64 = vector.broadcast %cst_35 : f32 to vector<16x16xf32>
    %65 = arith.mulf %64, %61 : vector<16x16xf32>
    %66 = arith.select %63, %61, %65 : vector<16x16xi1>, vector<16x16xf32>
    %67 = vector.broadcast %cst_18 : f32 to vector<16x16xf32>
    %68 = arith.select %3, %66, %67 : vector<16x16xi1>, vector<16x16xf32>
    %cst_36 = arith.constant dense<0xFF800000> : vector<16xf32>
    %69 = vector.multi_reduction <maximumf>, %68, %cst_36 [1] : vector<16x16xf32> to vector<16xf32>
    %70 = vector.shape_cast %69 : vector<16xf32> to vector<16x1xf32>
    %71 = vector.broadcast %70 : vector<16x1xf32> to vector<16x16xf32>
    %72 = arith.subf %68, %71 : vector<16x16xf32>
    %73 = math.exp %72 : vector<16x16xf32>
    %cst_37 = arith.constant 0.000000e+00 : f32
    %74 = vector.broadcast %cst_37 : f32 to vector<16x16xf32>
    %75 = arith.select %3, %73, %74 : vector<16x16xi1>, vector<16x16xf32>
    %cst_38 = arith.constant dense<0.000000e+00> : vector<16xf32>
    %76 = vector.multi_reduction <add>, %75, %cst_38 [1] : vector<16x16xf32> to vector<16xf32>
    %77 = vector.shape_cast %76 : vector<16xf32> to vector<16x1xf32>
    %cst_39 = arith.constant 9.99999968E-21 : f32
    %78 = vector.broadcast %cst_39 : f32 to vector<16x1xf32>
    %79 = arith.maximumf %77, %78 : vector<16x1xf32>
    %80 = tpu.reciprocal %79 {approx = true} : vector<16x1xf32> -> vector<16x1xf32>
    %81 = vector.broadcast %80 : vector<16x1xf32> to vector<16x16xf32>
    %82 = arith.mulf %75, %81 : vector<16x16xf32>
    %83 = arith.truncf %82 : vector<16x16xf32> to vector<16x16xbf16>
    %84 = arith.truncf %56 : vector<16x32xf32> to vector<16x32xbf16>
    %cst_40 = arith.constant dense<0.000000e+00> : vector<16x32xf32>
    %85 = tpu.matmul %83, %84, %cst_40 {dimension_numbers = #tpu.dot_dimension_numbers<[1], [0], [0], [1], [0, 0, 1, 1], [], []>} : vector<16x16xbf16>, vector<16x32xbf16>, vector<16x32xf32> -> vector<16x32xf32>
    %86 = arith.addf %85, %9 : vector<16x32xf32>
    %87 = arith.subf %86, %54 : vector<16x32xf32>
    %88 = vector.broadcast %0 : f32 to vector<16x32xf32>
    %89 = arith.mulf %88, %87 : vector<16x32xf32>
    %cst_41 = arith.constant 5.000000e-01 : f32
    %90 = arith.mulf %cst_41, %cst_19 : f32
    %91 = vector.broadcast %90 : f32 to vector<16x32xf32>
    %92 = arith.mulf %91, %89 : vector<16x32xf32>
    %93 = arith.addf %15, %92 : vector<16x32xf32>
    %94 = arith.truncf %93 : vector<16x32xf32> to vector<16x32xbf16>
    %cst_42 = arith.constant dense<0.000000e+00> : vector<16x32xf32>
    %95 = tpu.matmul %94, %4, %cst_42 {dimension_numbers = #tpu.dot_dimension_numbers<[1], [0], [0], [1], [0, 0, 1, 1], [], []>} : vector<16x32xbf16>, vector<32x32xbf16>, vector<16x32xf32> -> vector<16x32xf32>
    %cst_43 = arith.constant dense<0.000000e+00> : vector<16x1xf32>
    %96 = tpu.matmul %95, %6, %cst_43 {dimension_numbers = #tpu.dot_dimension_numbers<[1], [1], [0], [0], [0, 0, 1, 0], [], []>} : vector<16x32xf32>, vector<1x32xf32>, vector<16x1xf32> -> vector<16x1xf32>
    %cst_44 = arith.constant dense<0.000000e+00> : vector<1x16xf32>
    %97 = tpu.matmul %5, %95, %cst_44 {dimension_numbers = #tpu.dot_dimension_numbers<[1], [1], [0], [0], [0, 0, 1, 0], [], []>} : vector<1x32xf32>, vector<16x32xf32>, vector<1x16xf32> -> vector<1x16xf32>
    %98 = vector.broadcast %96 : vector<16x1xf32> to vector<16x16xf32>
    %99 = vector.broadcast %97 : vector<1x16xf32> to vector<16x16xf32>
    %100 = arith.addf %98, %99 : vector<16x16xf32>
    %cst_45 = arith.constant 0.000000e+00 : f32
    %101 = vector.broadcast %cst_45 : f32 to vector<16x16xf32>
    %102 = arith.cmpf ogt, %100, %101 : vector<16x16xf32>
    %cst_46 = arith.constant 2.000000e-01 : f32
    %103 = vector.broadcast %cst_46 : f32 to vector<16x16xf32>
    %104 = arith.mulf %103, %100 : vector<16x16xf32>
    %105 = arith.select %102, %100, %104 : vector<16x16xi1>, vector<16x16xf32>
    %106 = vector.broadcast %cst_18 : f32 to vector<16x16xf32>
    %107 = arith.select %3, %105, %106 : vector<16x16xi1>, vector<16x16xf32>
    %cst_47 = arith.constant dense<0xFF800000> : vector<16xf32>
    %108 = vector.multi_reduction <maximumf>, %107, %cst_47 [1] : vector<16x16xf32> to vector<16xf32>
    %109 = vector.shape_cast %108 : vector<16xf32> to vector<16x1xf32>
    %110 = vector.broadcast %109 : vector<16x1xf32> to vector<16x16xf32>
    %111 = arith.subf %107, %110 : vector<16x16xf32>
    %112 = math.exp %111 : vector<16x16xf32>
    %cst_48 = arith.constant 0.000000e+00 : f32
    %113 = vector.broadcast %cst_48 : f32 to vector<16x16xf32>
    %114 = arith.select %3, %112, %113 : vector<16x16xi1>, vector<16x16xf32>
    %cst_49 = arith.constant dense<0.000000e+00> : vector<16xf32>
    %115 = vector.multi_reduction <add>, %114, %cst_49 [1] : vector<16x16xf32> to vector<16xf32>
    %116 = vector.shape_cast %115 : vector<16xf32> to vector<16x1xf32>
    %cst_50 = arith.constant 9.99999968E-21 : f32
    %117 = vector.broadcast %cst_50 : f32 to vector<16x1xf32>
    %118 = arith.maximumf %116, %117 : vector<16x1xf32>
    %119 = tpu.reciprocal %118 {approx = true} : vector<16x1xf32> -> vector<16x1xf32>
    %120 = vector.broadcast %119 : vector<16x1xf32> to vector<16x16xf32>
    %121 = arith.mulf %114, %120 : vector<16x16xf32>
    %122 = arith.truncf %121 : vector<16x16xf32> to vector<16x16xbf16>
    %123 = arith.truncf %95 : vector<16x32xf32> to vector<16x32xbf16>
    %cst_51 = arith.constant dense<0.000000e+00> : vector<16x32xf32>
    %124 = tpu.matmul %122, %123, %cst_51 {dimension_numbers = #tpu.dot_dimension_numbers<[1], [0], [0], [1], [0, 0, 1, 1], [], []>} : vector<16x16xbf16>, vector<16x32xbf16>, vector<16x32xf32> -> vector<16x32xf32>
    %125 = arith.addf %124, %9 : vector<16x32xf32>
    %126 = arith.subf %125, %93 : vector<16x32xf32>
    %127 = vector.broadcast %0 : f32 to vector<16x32xf32>
    %128 = arith.mulf %127, %126 : vector<16x32xf32>
    %129 = vector.broadcast %cst_19 : f32 to vector<16x32xf32>
    %130 = arith.mulf %129, %128 : vector<16x32xf32>
    %131 = arith.addf %15, %130 : vector<16x32xf32>
    %132 = arith.truncf %131 : vector<16x32xf32> to vector<16x32xbf16>
    %cst_52 = arith.constant dense<0.000000e+00> : vector<16x32xf32>
    %133 = tpu.matmul %132, %4, %cst_52 {dimension_numbers = #tpu.dot_dimension_numbers<[1], [0], [0], [1], [0, 0, 1, 1], [], []>} : vector<16x32xbf16>, vector<32x32xbf16>, vector<16x32xf32> -> vector<16x32xf32>
    %cst_53 = arith.constant dense<0.000000e+00> : vector<16x1xf32>
    %134 = tpu.matmul %133, %6, %cst_53 {dimension_numbers = #tpu.dot_dimension_numbers<[1], [1], [0], [0], [0, 0, 1, 0], [], []>} : vector<16x32xf32>, vector<1x32xf32>, vector<16x1xf32> -> vector<16x1xf32>
    %cst_54 = arith.constant dense<0.000000e+00> : vector<1x16xf32>
    %135 = tpu.matmul %5, %133, %cst_54 {dimension_numbers = #tpu.dot_dimension_numbers<[1], [1], [0], [0], [0, 0, 1, 0], [], []>} : vector<1x32xf32>, vector<16x32xf32>, vector<1x16xf32> -> vector<1x16xf32>
    %136 = vector.broadcast %134 : vector<16x1xf32> to vector<16x16xf32>
    %137 = vector.broadcast %135 : vector<1x16xf32> to vector<16x16xf32>
    %138 = arith.addf %136, %137 : vector<16x16xf32>
    %cst_55 = arith.constant 0.000000e+00 : f32
    %139 = vector.broadcast %cst_55 : f32 to vector<16x16xf32>
    %140 = arith.cmpf ogt, %138, %139 : vector<16x16xf32>
    %cst_56 = arith.constant 2.000000e-01 : f32
    %141 = vector.broadcast %cst_56 : f32 to vector<16x16xf32>
    %142 = arith.mulf %141, %138 : vector<16x16xf32>
    %143 = arith.select %140, %138, %142 : vector<16x16xi1>, vector<16x16xf32>
    %144 = vector.broadcast %cst_18 : f32 to vector<16x16xf32>
    %145 = arith.select %3, %143, %144 : vector<16x16xi1>, vector<16x16xf32>
    %cst_57 = arith.constant dense<0xFF800000> : vector<16xf32>
    %146 = vector.multi_reduction <maximumf>, %145, %cst_57 [1] : vector<16x16xf32> to vector<16xf32>
    %147 = vector.shape_cast %146 : vector<16xf32> to vector<16x1xf32>
    %148 = vector.broadcast %147 : vector<16x1xf32> to vector<16x16xf32>
    %149 = arith.subf %145, %148 : vector<16x16xf32>
    %150 = math.exp %149 : vector<16x16xf32>
    %cst_58 = arith.constant 0.000000e+00 : f32
    %151 = vector.broadcast %cst_58 : f32 to vector<16x16xf32>
    %152 = arith.select %3, %150, %151 : vector<16x16xi1>, vector<16x16xf32>
    %cst_59 = arith.constant dense<0.000000e+00> : vector<16xf32>
    %153 = vector.multi_reduction <add>, %152, %cst_59 [1] : vector<16x16xf32> to vector<16xf32>
    %154 = vector.shape_cast %153 : vector<16xf32> to vector<16x1xf32>
    %cst_60 = arith.constant 9.99999968E-21 : f32
    %155 = vector.broadcast %cst_60 : f32 to vector<16x1xf32>
    %156 = arith.maximumf %154, %155 : vector<16x1xf32>
    %157 = tpu.reciprocal %156 {approx = true} : vector<16x1xf32> -> vector<16x1xf32>
    %158 = vector.broadcast %157 : vector<16x1xf32> to vector<16x16xf32>
    %159 = arith.mulf %152, %158 : vector<16x16xf32>
    %160 = arith.truncf %159 : vector<16x16xf32> to vector<16x16xbf16>
    %161 = arith.truncf %133 : vector<16x32xf32> to vector<16x32xbf16>
    %cst_61 = arith.constant dense<0.000000e+00> : vector<16x32xf32>
    %162 = tpu.matmul %160, %161, %cst_61 {dimension_numbers = #tpu.dot_dimension_numbers<[1], [0], [0], [1], [0, 0, 1, 1], [], []>} : vector<16x16xbf16>, vector<16x32xbf16>, vector<16x32xf32> -> vector<16x32xf32>
    %163 = arith.addf %162, %9 : vector<16x32xf32>
    %164 = arith.subf %163, %131 : vector<16x32xf32>
    %165 = vector.broadcast %0 : f32 to vector<16x32xf32>
    %166 = arith.mulf %165, %164 : vector<16x32xf32>
    %cst_62 = arith.constant 6.000000e+00 : f32
    %167 = arith.divf %cst_19, %cst_62 : f32
    %168 = arith.addf %89, %128 : vector<16x32xf32>
    %cst_63 = arith.constant 2.000000e+00 : f32
    %169 = vector.broadcast %cst_63 : f32 to vector<16x32xf32>
    %170 = arith.mulf %169, %168 : vector<16x32xf32>
    %171 = arith.addf %50, %170 : vector<16x32xf32>
    %172 = arith.addf %171, %166 : vector<16x32xf32>
    %173 = vector.broadcast %167 : f32 to vector<16x32xf32>
    %174 = arith.mulf %173, %172 : vector<16x32xf32>
    %175 = arith.addf %15, %174 : vector<16x32xf32>
    %c1_i32 = arith.constant 1 : i32
    %176 = arith.truncf %175 : vector<16x32xf32> to vector<16x32xbf16>
    %cst_64 = arith.constant dense<0.000000e+00> : vector<16x32xf32>
    %177 = tpu.matmul %176, %4, %cst_64 {dimension_numbers = #tpu.dot_dimension_numbers<[1], [0], [0], [1], [0, 0, 1, 1], [], []>} : vector<16x32xbf16>, vector<32x32xbf16>, vector<16x32xf32> -> vector<16x32xf32>
    %cst_65 = arith.constant dense<0.000000e+00> : vector<16x1xf32>
    %178 = tpu.matmul %177, %6, %cst_65 {dimension_numbers = #tpu.dot_dimension_numbers<[1], [1], [0], [0], [0, 0, 1, 0], [], []>} : vector<16x32xf32>, vector<1x32xf32>, vector<16x1xf32> -> vector<16x1xf32>
    %cst_66 = arith.constant dense<0.000000e+00> : vector<1x16xf32>
    %179 = tpu.matmul %5, %177, %cst_66 {dimension_numbers = #tpu.dot_dimension_numbers<[1], [1], [0], [0], [0, 0, 1, 0], [], []>} : vector<1x32xf32>, vector<16x32xf32>, vector<1x16xf32> -> vector<1x16xf32>
    %180 = vector.broadcast %178 : vector<16x1xf32> to vector<16x16xf32>
    %181 = vector.broadcast %179 : vector<1x16xf32> to vector<16x16xf32>
    %182 = arith.addf %180, %181 : vector<16x16xf32>
    %cst_67 = arith.constant 0.000000e+00 : f32
    %183 = vector.broadcast %cst_67 : f32 to vector<16x16xf32>
    %184 = arith.cmpf ogt, %182, %183 : vector<16x16xf32>
    %cst_68 = arith.constant 2.000000e-01 : f32
    %185 = vector.broadcast %cst_68 : f32 to vector<16x16xf32>
    %186 = arith.mulf %185, %182 : vector<16x16xf32>
    %187 = arith.select %184, %182, %186 : vector<16x16xi1>, vector<16x16xf32>
    %188 = vector.broadcast %cst_18 : f32 to vector<16x16xf32>
    %189 = arith.select %3, %187, %188 : vector<16x16xi1>, vector<16x16xf32>
    %cst_69 = arith.constant dense<0xFF800000> : vector<16xf32>
    %190 = vector.multi_reduction <maximumf>, %189, %cst_69 [1] : vector<16x16xf32> to vector<16xf32>
    %191 = vector.shape_cast %190 : vector<16xf32> to vector<16x1xf32>
    %192 = vector.broadcast %191 : vector<16x1xf32> to vector<16x16xf32>
    %193 = arith.subf %189, %192 : vector<16x16xf32>
    %194 = math.exp %193 : vector<16x16xf32>
    %cst_70 = arith.constant 0.000000e+00 : f32
    %195 = vector.broadcast %cst_70 : f32 to vector<16x16xf32>
    %196 = arith.select %3, %194, %195 : vector<16x16xi1>, vector<16x16xf32>
    %cst_71 = arith.constant dense<0.000000e+00> : vector<16xf32>
    %197 = vector.multi_reduction <add>, %196, %cst_71 [1] : vector<16x16xf32> to vector<16xf32>
    %198 = vector.shape_cast %197 : vector<16xf32> to vector<16x1xf32>
    %cst_72 = arith.constant 9.99999968E-21 : f32
    %199 = vector.broadcast %cst_72 : f32 to vector<16x1xf32>
    %200 = arith.maximumf %198, %199 : vector<16x1xf32>
    %201 = tpu.reciprocal %200 {approx = true} : vector<16x1xf32> -> vector<16x1xf32>
    %202 = vector.broadcast %201 : vector<16x1xf32> to vector<16x16xf32>
    %203 = arith.mulf %196, %202 : vector<16x16xf32>
    %204 = arith.truncf %203 : vector<16x16xf32> to vector<16x16xbf16>
    %205 = arith.truncf %177 : vector<16x32xf32> to vector<16x32xbf16>
    %cst_73 = arith.constant dense<0.000000e+00> : vector<16x32xf32>
    %206 = tpu.matmul %204, %205, %cst_73 {dimension_numbers = #tpu.dot_dimension_numbers<[1], [0], [0], [1], [0, 0, 1, 1], [], []>} : vector<16x16xbf16>, vector<16x32xbf16>, vector<16x32xf32> -> vector<16x32xf32>
    %207 = arith.addf %206, %9 : vector<16x32xf32>
    %208 = arith.subf %207, %175 : vector<16x32xf32>
    %209 = vector.broadcast %0 : f32 to vector<16x32xf32>
    %210 = arith.mulf %209, %208 : vector<16x32xf32>
    %cst_74 = arith.constant 5.000000e-01 : f32
    %211 = arith.mulf %cst_74, %cst_19 : f32
    %212 = vector.broadcast %211 : f32 to vector<16x32xf32>
    %213 = arith.mulf %212, %210 : vector<16x32xf32>
    %214 = arith.addf %175, %213 : vector<16x32xf32>
    %215 = arith.truncf %214 : vector<16x32xf32> to vector<16x32xbf16>
    %cst_75 = arith.constant dense<0.000000e+00> : vector<16x32xf32>
    %216 = tpu.matmul %215, %4, %cst_75 {dimension_numbers = #tpu.dot_dimension_numbers<[1], [0], [0], [1], [0, 0, 1, 1], [], []>} : vector<16x32xbf16>, vector<32x32xbf16>, vector<16x32xf32> -> vector<16x32xf32>
    %cst_76 = arith.constant dense<0.000000e+00> : vector<16x1xf32>
    %217 = tpu.matmul %216, %6, %cst_76 {dimension_numbers = #tpu.dot_dimension_numbers<[1], [1], [0], [0], [0, 0, 1, 0], [], []>} : vector<16x32xf32>, vector<1x32xf32>, vector<16x1xf32> -> vector<16x1xf32>
    %cst_77 = arith.constant dense<0.000000e+00> : vector<1x16xf32>
    %218 = tpu.matmul %5, %216, %cst_77 {dimension_numbers = #tpu.dot_dimension_numbers<[1], [1], [0], [0], [0, 0, 1, 0], [], []>} : vector<1x32xf32>, vector<16x32xf32>, vector<1x16xf32> -> vector<1x16xf32>
    %219 = vector.broadcast %217 : vector<16x1xf32> to vector<16x16xf32>
    %220 = vector.broadcast %218 : vector<1x16xf32> to vector<16x16xf32>
    %221 = arith.addf %219, %220 : vector<16x16xf32>
    %cst_78 = arith.constant 0.000000e+00 : f32
    %222 = vector.broadcast %cst_78 : f32 to vector<16x16xf32>
    %223 = arith.cmpf ogt, %221, %222 : vector<16x16xf32>
    %cst_79 = arith.constant 2.000000e-01 : f32
    %224 = vector.broadcast %cst_79 : f32 to vector<16x16xf32>
    %225 = arith.mulf %224, %221 : vector<16x16xf32>
    %226 = arith.select %223, %221, %225 : vector<16x16xi1>, vector<16x16xf32>
    %227 = vector.broadcast %cst_18 : f32 to vector<16x16xf32>
    %228 = arith.select %3, %226, %227 : vector<16x16xi1>, vector<16x16xf32>
    %cst_80 = arith.constant dense<0xFF800000> : vector<16xf32>
    %229 = vector.multi_reduction <maximumf>, %228, %cst_80 [1] : vector<16x16xf32> to vector<16xf32>
    %230 = vector.shape_cast %229 : vector<16xf32> to vector<16x1xf32>
    %231 = vector.broadcast %230 : vector<16x1xf32> to vector<16x16xf32>
    %232 = arith.subf %228, %231 : vector<16x16xf32>
    %233 = math.exp %232 : vector<16x16xf32>
    %cst_81 = arith.constant 0.000000e+00 : f32
    %234 = vector.broadcast %cst_81 : f32 to vector<16x16xf32>
    %235 = arith.select %3, %233, %234 : vector<16x16xi1>, vector<16x16xf32>
    %cst_82 = arith.constant dense<0.000000e+00> : vector<16xf32>
    %236 = vector.multi_reduction <add>, %235, %cst_82 [1] : vector<16x16xf32> to vector<16xf32>
    %237 = vector.shape_cast %236 : vector<16xf32> to vector<16x1xf32>
    %cst_83 = arith.constant 9.99999968E-21 : f32
    %238 = vector.broadcast %cst_83 : f32 to vector<16x1xf32>
    %239 = arith.maximumf %237, %238 : vector<16x1xf32>
    %240 = tpu.reciprocal %239 {approx = true} : vector<16x1xf32> -> vector<16x1xf32>
    %241 = vector.broadcast %240 : vector<16x1xf32> to vector<16x16xf32>
    %242 = arith.mulf %235, %241 : vector<16x16xf32>
    %243 = arith.truncf %242 : vector<16x16xf32> to vector<16x16xbf16>
    %244 = arith.truncf %216 : vector<16x32xf32> to vector<16x32xbf16>
    %cst_84 = arith.constant dense<0.000000e+00> : vector<16x32xf32>
    %245 = tpu.matmul %243, %244, %cst_84 {dimension_numbers = #tpu.dot_dimension_numbers<[1], [0], [0], [1], [0, 0, 1, 1], [], []>} : vector<16x16xbf16>, vector<16x32xbf16>, vector<16x32xf32> -> vector<16x32xf32>
    %246 = arith.addf %245, %9 : vector<16x32xf32>
    %247 = arith.subf %246, %214 : vector<16x32xf32>
    %248 = vector.broadcast %0 : f32 to vector<16x32xf32>
    %249 = arith.mulf %248, %247 : vector<16x32xf32>
    %cst_85 = arith.constant 5.000000e-01 : f32
    %250 = arith.mulf %cst_85, %cst_19 : f32
    %251 = vector.broadcast %250 : f32 to vector<16x32xf32>
    %252 = arith.mulf %251, %249 : vector<16x32xf32>
    %253 = arith.addf %175, %252 : vector<16x32xf32>
    %254 = arith.truncf %253 : vector<16x32xf32> to vector<16x32xbf16>
    %cst_86 = arith.constant dense<0.000000e+00> : vector<16x32xf32>
    %255 = tpu.matmul %254, %4, %cst_86 {dimension_numbers = #tpu.dot_dimension_numbers<[1], [0], [0], [1], [0, 0, 1, 1], [], []>} : vector<16x32xbf16>, vector<32x32xbf16>, vector<16x32xf32> -> vector<16x32xf32>
    %cst_87 = arith.constant dense<0.000000e+00> : vector<16x1xf32>
    %256 = tpu.matmul %255, %6, %cst_87 {dimension_numbers = #tpu.dot_dimension_numbers<[1], [1], [0], [0], [0, 0, 1, 0], [], []>} : vector<16x32xf32>, vector<1x32xf32>, vector<16x1xf32> -> vector<16x1xf32>
    %cst_88 = arith.constant dense<0.000000e+00> : vector<1x16xf32>
    %257 = tpu.matmul %5, %255, %cst_88 {dimension_numbers = #tpu.dot_dimension_numbers<[1], [1], [0], [0], [0, 0, 1, 0], [], []>} : vector<1x32xf32>, vector<16x32xf32>, vector<1x16xf32> -> vector<1x16xf32>
    %258 = vector.broadcast %256 : vector<16x1xf32> to vector<16x16xf32>
    %259 = vector.broadcast %257 : vector<1x16xf32> to vector<16x16xf32>
    %260 = arith.addf %258, %259 : vector<16x16xf32>
    %cst_89 = arith.constant 0.000000e+00 : f32
    %261 = vector.broadcast %cst_89 : f32 to vector<16x16xf32>
    %262 = arith.cmpf ogt, %260, %261 : vector<16x16xf32>
    %cst_90 = arith.constant 2.000000e-01 : f32
    %263 = vector.broadcast %cst_90 : f32 to vector<16x16xf32>
    %264 = arith.mulf %263, %260 : vector<16x16xf32>
    %265 = arith.select %262, %260, %264 : vector<16x16xi1>, vector<16x16xf32>
    %266 = vector.broadcast %cst_18 : f32 to vector<16x16xf32>
    %267 = arith.select %3, %265, %266 : vector<16x16xi1>, vector<16x16xf32>
    %cst_91 = arith.constant dense<0xFF800000> : vector<16xf32>
    %268 = vector.multi_reduction <maximumf>, %267, %cst_91 [1] : vector<16x16xf32> to vector<16xf32>
    %269 = vector.shape_cast %268 : vector<16xf32> to vector<16x1xf32>
    %270 = vector.broadcast %269 : vector<16x1xf32> to vector<16x16xf32>
    %271 = arith.subf %267, %270 : vector<16x16xf32>
    %272 = math.exp %271 : vector<16x16xf32>
    %cst_92 = arith.constant 0.000000e+00 : f32
    %273 = vector.broadcast %cst_92 : f32 to vector<16x16xf32>
    %274 = arith.select %3, %272, %273 : vector<16x16xi1>, vector<16x16xf32>
    %cst_93 = arith.constant dense<0.000000e+00> : vector<16xf32>
    %275 = vector.multi_reduction <add>, %274, %cst_93 [1] : vector<16x16xf32> to vector<16xf32>
    %276 = vector.shape_cast %275 : vector<16xf32> to vector<16x1xf32>
    %cst_94 = arith.constant 9.99999968E-21 : f32
    %277 = vector.broadcast %cst_94 : f32 to vector<16x1xf32>
    %278 = arith.maximumf %276, %277 : vector<16x1xf32>
    %279 = tpu.reciprocal %278 {approx = true} : vector<16x1xf32> -> vector<16x1xf32>
    %280 = vector.broadcast %279 : vector<16x1xf32> to vector<16x16xf32>
    %281 = arith.mulf %274, %280 : vector<16x16xf32>
    %282 = arith.truncf %281 : vector<16x16xf32> to vector<16x16xbf16>
    %283 = arith.truncf %255 : vector<16x32xf32> to vector<16x32xbf16>
    %cst_95 = arith.constant dense<0.000000e+00> : vector<16x32xf32>
    %284 = tpu.matmul %282, %283, %cst_95 {dimension_numbers = #tpu.dot_dimension_numbers<[1], [0], [0], [1], [0, 0, 1, 1], [], []>} : vector<16x16xbf16>, vector<16x32xbf16>, vector<16x32xf32> -> vector<16x32xf32>
    %285 = arith.addf %284, %9 : vector<16x32xf32>
    %286 = arith.subf %285, %253 : vector<16x32xf32>
    %287 = vector.broadcast %0 : f32 to vector<16x32xf32>
    %288 = arith.mulf %287, %286 : vector<16x32xf32>
    %289 = vector.broadcast %cst_19 : f32 to vector<16x32xf32>
    %290 = arith.mulf %289, %288 : vector<16x32xf32>
    %291 = arith.addf %175, %290 : vector<16x32xf32>
    %292 = arith.truncf %291 : vector<16x32xf32> to vector<16x32xbf16>
    %cst_96 = arith.constant dense<0.000000e+00> : vector<16x32xf32>
    %293 = tpu.matmul %292, %4, %cst_96 {dimension_numbers = #tpu.dot_dimension_numbers<[1], [0], [0], [1], [0, 0, 1, 1], [], []>} : vector<16x32xbf16>, vector<32x32xbf16>, vector<16x32xf32> -> vector<16x32xf32>
    %cst_97 = arith.constant dense<0.000000e+00> : vector<16x1xf32>
    %294 = tpu.matmul %293, %6, %cst_97 {dimension_numbers = #tpu.dot_dimension_numbers<[1], [1], [0], [0], [0, 0, 1, 0], [], []>} : vector<16x32xf32>, vector<1x32xf32>, vector<16x1xf32> -> vector<16x1xf32>
    %cst_98 = arith.constant dense<0.000000e+00> : vector<1x16xf32>
    %295 = tpu.matmul %5, %293, %cst_98 {dimension_numbers = #tpu.dot_dimension_numbers<[1], [1], [0], [0], [0, 0, 1, 0], [], []>} : vector<1x32xf32>, vector<16x32xf32>, vector<1x16xf32> -> vector<1x16xf32>
    %296 = vector.broadcast %294 : vector<16x1xf32> to vector<16x16xf32>
    %297 = vector.broadcast %295 : vector<1x16xf32> to vector<16x16xf32>
    %298 = arith.addf %296, %297 : vector<16x16xf32>
    %cst_99 = arith.constant 0.000000e+00 : f32
    %299 = vector.broadcast %cst_99 : f32 to vector<16x16xf32>
    %300 = arith.cmpf ogt, %298, %299 : vector<16x16xf32>
    %cst_100 = arith.constant 2.000000e-01 : f32
    %301 = vector.broadcast %cst_100 : f32 to vector<16x16xf32>
    %302 = arith.mulf %301, %298 : vector<16x16xf32>
    %303 = arith.select %300, %298, %302 : vector<16x16xi1>, vector<16x16xf32>
    %304 = vector.broadcast %cst_18 : f32 to vector<16x16xf32>
    %305 = arith.select %3, %303, %304 : vector<16x16xi1>, vector<16x16xf32>
    %cst_101 = arith.constant dense<0xFF800000> : vector<16xf32>
    %306 = vector.multi_reduction <maximumf>, %305, %cst_101 [1] : vector<16x16xf32> to vector<16xf32>
    %307 = vector.shape_cast %306 : vector<16xf32> to vector<16x1xf32>
    %308 = vector.broadcast %307 : vector<16x1xf32> to vector<16x16xf32>
    %309 = arith.subf %305, %308 : vector<16x16xf32>
    %310 = math.exp %309 : vector<16x16xf32>
    %cst_102 = arith.constant 0.000000e+00 : f32
    %311 = vector.broadcast %cst_102 : f32 to vector<16x16xf32>
    %312 = arith.select %3, %310, %311 : vector<16x16xi1>, vector<16x16xf32>
    %cst_103 = arith.constant dense<0.000000e+00> : vector<16xf32>
    %313 = vector.multi_reduction <add>, %312, %cst_103 [1] : vector<16x16xf32> to vector<16xf32>
    %314 = vector.shape_cast %313 : vector<16xf32> to vector<16x1xf32>
    %cst_104 = arith.constant 9.99999968E-21 : f32
    %315 = vector.broadcast %cst_104 : f32 to vector<16x1xf32>
    %316 = arith.maximumf %314, %315 : vector<16x1xf32>
    %317 = tpu.reciprocal %316 {approx = true} : vector<16x1xf32> -> vector<16x1xf32>
    %318 = vector.broadcast %317 : vector<16x1xf32> to vector<16x16xf32>
    %319 = arith.mulf %312, %318 : vector<16x16xf32>
    %320 = arith.truncf %319 : vector<16x16xf32> to vector<16x16xbf16>
    %321 = arith.truncf %293 : vector<16x32xf32> to vector<16x32xbf16>
    %cst_105 = arith.constant dense<0.000000e+00> : vector<16x32xf32>
    %322 = tpu.matmul %320, %321, %cst_105 {dimension_numbers = #tpu.dot_dimension_numbers<[1], [0], [0], [1], [0, 0, 1, 1], [], []>} : vector<16x16xbf16>, vector<16x32xbf16>, vector<16x32xf32> -> vector<16x32xf32>
    %323 = arith.addf %322, %9 : vector<16x32xf32>
    %324 = arith.subf %323, %291 : vector<16x32xf32>
    %325 = vector.broadcast %0 : f32 to vector<16x32xf32>
    %326 = arith.mulf %325, %324 : vector<16x32xf32>
    %cst_106 = arith.constant 6.000000e+00 : f32
    %327 = arith.divf %cst_19, %cst_106 : f32
    %328 = arith.addf %249, %288 : vector<16x32xf32>
    %cst_107 = arith.constant 2.000000e+00 : f32
    %329 = vector.broadcast %cst_107 : f32 to vector<16x32xf32>
    %330 = arith.mulf %329, %328 : vector<16x32xf32>
    %331 = arith.addf %210, %330 : vector<16x32xf32>
    %332 = arith.addf %331, %326 : vector<16x32xf32>
    %333 = vector.broadcast %327 : f32 to vector<16x32xf32>
    %334 = arith.mulf %333, %332 : vector<16x32xf32>
    %335 = arith.addf %175, %334 : vector<16x32xf32>
    %336 = math.tanh %335 : vector<16x32xf32>
    %c0_108 = arith.constant 0 : index
    %c0_109 = arith.constant 0 : index
    %337 = vector.load %arg2[%c0_108, %c0_109] : memref<2x16xf32, #tpu.memory_space<vmem>>, vector<2x16xf32>
    %c0_110 = arith.constant 0 : index
    %c0_111 = arith.constant 0 : index
    %338 = vector.load %arg3[%c0_110, %c0_111] : memref<16x2xf32, #tpu.memory_space<vmem>>, vector<16x2xf32>
    %cst_112 = arith.constant dense<0.000000e+00> : vector<2x32xf32>
    %339 = tpu.matmul %337, %336, %cst_112 {dimension_numbers = #tpu.dot_dimension_numbers<[1], [0], [0], [1], [0, 0, 1, 1], [], []>} : vector<2x16xf32>, vector<16x32xf32>, vector<2x32xf32> -> vector<2x32xf32>
    %cst_113 = arith.constant dense<0.000000e+00> : vector<2xf32>
    %340 = vector.multi_reduction <add>, %337, %cst_113 [1] : vector<2x16xf32> to vector<2xf32>
    %341 = vector.shape_cast %340 : vector<2xf32> to vector<2x1xf32>
    %cst_114 = arith.constant 1.000000e+00 : f32
    %342 = vector.broadcast %cst_114 : f32 to vector<2x1xf32>
    %343 = arith.maximumf %341, %342 : vector<2x1xf32>
    %344 = tpu.reciprocal %343 {approx = true} : vector<2x1xf32> -> vector<2x1xf32>
    %345 = vector.broadcast %344 : vector<2x1xf32> to vector<2x32xf32>
    %346 = arith.mulf %339, %345 : vector<2x32xf32>
    %347 = vector.extract_strided_slice %338 {offsets = [0, 0], sizes = [16, 1], strides = [1, 1]} : vector<16x2xf32> to vector<16x1xf32>
    %cst_115 = arith.constant 0.000000e+00 : f32
    %348 = vector.broadcast %cst_115 : f32 to vector<16x1xf32>
    %349 = arith.cmpf ogt, %347, %348 : vector<16x1xf32>
    %cst_116 = arith.constant -1.000000e+30 : f32
    %350 = vector.shape_cast %349 : vector<16x1xi1> to vector<16x1xi1>
    %351 = vector.broadcast %350 : vector<16x1xi1> to vector<16x32xi1>
    %352 = vector.broadcast %cst_116 : f32 to vector<16x32xf32>
    %353 = arith.select %351, %336, %352 : vector<16x32xi1>, vector<16x32xf32>
    %cst_117 = arith.constant dense<0xFF800000> : vector<32xf32>
    %354 = vector.multi_reduction <maximumf>, %353, %cst_117 [0] : vector<16x32xf32> to vector<32xf32>
    %355 = vector.shape_cast %354 : vector<32xf32> to vector<1x32xf32>
    %356 = vector.extract_strided_slice %338 {offsets = [0, 1], sizes = [16, 1], strides = [1, 1]} : vector<16x2xf32> to vector<16x1xf32>
    %cst_118 = arith.constant 0.000000e+00 : f32
    %357 = vector.broadcast %cst_118 : f32 to vector<16x1xf32>
    %358 = arith.cmpf ogt, %356, %357 : vector<16x1xf32>
    %cst_119 = arith.constant -1.000000e+30 : f32
    %359 = vector.shape_cast %358 : vector<16x1xi1> to vector<16x1xi1>
    %360 = vector.broadcast %359 : vector<16x1xi1> to vector<16x32xi1>
    %361 = vector.broadcast %cst_119 : f32 to vector<16x32xf32>
    %362 = arith.select %360, %336, %361 : vector<16x32xi1>, vector<16x32xf32>
    %cst_120 = arith.constant dense<0xFF800000> : vector<32xf32>
    %363 = vector.multi_reduction <maximumf>, %362, %cst_120 [0] : vector<16x32xf32> to vector<32xf32>
    %364 = vector.shape_cast %363 : vector<32xf32> to vector<1x32xf32>
    %365 = tpu.concatenate %355, %364 in 0 : vector<1x32xf32>, vector<1x32xf32> -> vector<2x32xf32>
    %cst_121 = arith.constant 0.000000e+00 : f32
    %366 = vector.broadcast %cst_121 : f32 to vector<2x1xf32>
    %367 = arith.cmpf ogt, %341, %366 : vector<2x1xf32>
    %cst_122 = arith.constant 0.000000e+00 : f32
    %368 = vector.shape_cast %367 : vector<2x1xi1> to vector<2x1xi1>
    %369 = vector.broadcast %368 : vector<2x1xi1> to vector<2x32xi1>
    %370 = vector.broadcast %cst_122 : f32 to vector<2x32xf32>
    %371 = arith.select %369, %365, %370 : vector<2x32xi1>, vector<2x32xf32>
    %372 = tpu.concatenate %339, %371, %346 in 1 : vector<2x32xf32>, vector<2x32xf32>, vector<2x32xf32> -> vector<2x96xf32>
    %c0_123 = arith.constant 0 : index
    %c0_124 = arith.constant 0 : index
    %373 = vector.load %arg10[%c0_123, %c0_124] : memref<96x48xf32, #tpu.memory_space<vmem>>, vector<96x48xf32>
    %cst_125 = arith.constant dense<0.000000e+00> : vector<2x48xf32>
    %374 = tpu.matmul %372, %373, %cst_125 {dimension_numbers = #tpu.dot_dimension_numbers<[1], [0], [0], [1], [0, 0, 1, 1], [], []>} : vector<2x96xf32>, vector<96x48xf32>, vector<2x48xf32> -> vector<2x48xf32>
    %c0_126 = arith.constant 0 : index
    %c0_127 = arith.constant 0 : index
    %375 = vector.load %arg11[%c0_126, %c0_127] : memref<1x48xf32, #tpu.memory_space<vmem>>, vector<1x48xf32>
    %376 = vector.broadcast %375 : vector<1x48xf32> to vector<2x48xf32>
    %377 = arith.addf %374, %376 : vector<2x48xf32>
    %cst_128 = arith.constant 0.000000e+00 : f32
    %378 = vector.broadcast %cst_128 : f32 to vector<2x48xf32>
    %379 = arith.cmpf ogt, %377, %378 : vector<2x48xf32>
    %cst_129 = arith.constant 0.00999999977 : f32
    %380 = vector.broadcast %cst_129 : f32 to vector<2x48xf32>
    %381 = arith.mulf %380, %377 : vector<2x48xf32>
    %382 = arith.select %379, %377, %381 : vector<2x48xi1>, vector<2x48xf32>
    %c0_130 = arith.constant 0 : index
    %c0_131 = arith.constant 0 : index
    %383 = vector.load %arg12[%c0_130, %c0_131] : memref<48x4xf32, #tpu.memory_space<vmem>>, vector<48x4xf32>
    %cst_132 = arith.constant dense<0.000000e+00> : vector<2x4xf32>
    %384 = tpu.matmul %382, %383, %cst_132 {dimension_numbers = #tpu.dot_dimension_numbers<[1], [0], [0], [1], [0, 0, 1, 1], [], []>} : vector<2x48xf32>, vector<48x4xf32>, vector<2x4xf32> -> vector<2x4xf32>
    %c0_133 = arith.constant 0 : index
    %c0_134 = arith.constant 0 : index
    %385 = vector.load %arg13[%c0_133, %c0_134] : memref<1x4xf32, #tpu.memory_space<vmem>>, vector<1x4xf32>
    %386 = vector.broadcast %385 : vector<1x4xf32> to vector<2x4xf32>
    %387 = arith.addf %384, %386 : vector<2x4xf32>
    %cst_135 = arith.constant 0.000000e+00 : f32
    %388 = vector.broadcast %cst_135 : f32 to vector<2x4xf32>
    %389 = arith.cmpf ogt, %387, %388 : vector<2x4xf32>
    %cst_136 = arith.constant 0.00999999977 : f32
    %390 = vector.broadcast %cst_136 : f32 to vector<2x4xf32>
    %391 = arith.mulf %390, %387 : vector<2x4xf32>
    %392 = arith.select %389, %387, %391 : vector<2x4xi1>, vector<2x4xf32>
    %c0_137 = arith.constant 0 : index
    %c0_138 = arith.constant 0 : index
    %393 = vector.load %arg15[%c0_137, %c0_138] : memref<2x4xf32, #tpu.memory_space<vmem>>, vector<2x4xf32>
    tpu.vector_store %arg15[%c0_137, %c0_138], %392 {strides = array<i32>} : memref<2x4xf32, #tpu.memory_space<vmem>>, vector<2x4xf32>,
    return
  }
}

</mosaic_0001>

<bundles_post_ra>
// kernel: grand_graph_prop_forward.1
= control target key start
LH: loop header
LB: loop body
LE: loop exit
PB: predicated region body
PF: predicated region fallthrough
CT: control target
= control target key end

     0   :  { %s4218_s0 = inlined_call_operand.hbm [shape: f32[16,8], index: 0, kind: input, shape index: {}]   ;;  %s4219_s1 = inlined_call_operand.hbm [shape: bf16[16,16], index: 1, kind: input, shape index: {}]   ;;  %s4220_s2 = inlined_call_operand.hbm [shape: f32[2,16], index: 2, kind: input, shape index: {}]   ;;  %s4221_s3 = inlined_call_operand.hbm [shape: f32[16,2], index: 3, kind: input, shape index: {}]   ;;  %s4222_s4 = inlined_call_operand.hbm [shape: f32[8,32], index: 4, kind: input, shape index: {}]   ;;  %s4223_s5 = inlined_call_operand.hbm [shape: f32[1,32], index: 5, kind: input, shape index: {}]   ;;  %s4224_s6 = inlined_call_operand.hbm [shape: bf16[32,32], index: 6, kind: input, shape index: {}]   ;;  %s4225_s7 = inlined_call_operand.hbm [shape: f32[1,32], index: 7, kind: input, shape index: {}]   ;;  %s4226_s8 = inlined_call_operand.hbm [shape: f32[1,32], index: 8, kind: input, shape index: {}]   ;;  %s4227_s9 = inlined_call_operand.hbm [shape: f32[1,32], index: 9, kind: input, shape index: {}]   ;;  %s4228_s10 = inlined_call_operand.hbm [shape: f32[96,48], index: 10, kind: input, shape index: {}]   ;;  %s4229_s11 = inlined_call_operand.hbm [shape: f32[1,48], index: 11, kind: input, shape index: {}]   ;;  %s4230_s12 = inlined_call_operand.hbm [shape: f32[48,4], index: 12, kind: input, shape index: {}]   ;;  %s4231_s13 = inlined_call_operand.hbm [shape: f32[1,4], index: 13, kind: input, shape index: {}]   ;;  %s4232_s14 = inlined_call_operand.<no memory space> [shape: f32[1,1], index: 14, kind: input, shape index: {}]   ;;  %s4233_s15 = inlined_call_operand.hbm [shape: f32[2,4], index: 15, kind: output, shape index: {}]  }
   0x1   :  { %4235 = sst [smem:[#allocation36_spill]] %s4233_s15 }
   0x2   :  { %21 = vsyncpa [#allocation4], 0 }
   0x3   :  { %22 = vsyncpa [#allocation7], 0 }
   0x4   :  { %23 = vsyncpa [#allocation10], 0 }
   0x5   :  { %24 = vsyncpa [#allocation13], 0 }
   0x6   :  { %25 = vsyncpa [#allocation16], 0 }
   0x7   :  { %26 = vsyncpa [#allocation19], 0 }
   0x8   :  { %27 = vsyncpa [#allocation22], 0 }
   0x9   :  { %28 = vsyncpa [#allocation25], 0 }
   0xa   :  { %29 = vsyncpa [#allocation5], 0  ;;  %s3403_s18 = smov [#allocation6]   ;;  %s3055_s22 = scalar_lea.hbm %s4219_s1, 128 }
   0xb   :  { %s47_s19 = sshll.u32 %s3403_s18, 4  ;;  %p3056_p0 = scmp.ne.s32.totalorder %s4219_s1, %s3055_s22  ;;  %s48_s19 = int_to_ptr.vmem [resolvable:$true] %s47_s19 }
   0xc   :  { %p3059_p1 = scmp.lt.u32.totalorder %s3055_s22, %s4219_s1 }
   0xe   :  { %p3061_p2 = pnand %p3059_p1, %p3056_p0 }
  0x10   :  { %3064 = shalt.err (!%p3061_p2)
}
  0x11   :  { %s3065_s27 = scalar_lea.vmem %s48_s19, 128  ;;  %p3070_p4 = scmp.lt.s32.totalorder %s48_s19, %s48_s19 }
  0x12   :  { %p3066_p3 = scmp.ne.s32.totalorder %s48_s19, %s3065_s27  ;;  %p3071_p5 = scmp.lt.s32.totalorder %s3065_s27, %s3065_s27 }
  0x14   :  { %p3072_p6 = por %p3071_p5, %p3070_p4 }
  0x16   :  { %p3073_p7 = pnand %p3072_p6, %p3066_p3 }
  0x18   :  { %3076 = shalt.err (!%p3073_p7)
}
  0x19   :  { %s3404_s28 = smov 64   ;;  %s3405_s29 = smov 4  }
  0x1a   :  { %53 = dma.hbm_to_vmem [thread:$0]  %s4219_s1, 128, %s48_s19, [#allocation7], %s3404_s28, %s3404_s28, %s3405_s29  }
  0x1b   :  { %s3406_s17 = smov [#allocation9]   ;;  %s3407_s20 = smov [#allocation12]  }
  0x1c   :  { %s69_s18 = sshll.u32 %s3406_s17, 4  ;;  %s92_s21 = sshll.u32 %s3407_s20, 4  ;;  %s70_s18 = int_to_ptr.vmem [resolvable:$true] %s69_s18  ;;  %s93_s21 = int_to_ptr.vmem [resolvable:$true] %s92_s21 }
  0x1d   :  { %s3077_s24 = scalar_lea.hbm %s4221_s3, 256 }
  0x1e   :  { %p3078_p8 = scmp.ne.s32.totalorder %s4221_s3, %s3077_s24  ;;  %p3081_p9 = scmp.lt.u32.totalorder %s3077_s24, %s4221_s3 }
  0x20   :  { %p3083_p10 = pnand %p3081_p9, %p3078_p8 }
  0x22   :  { %3086 = shalt.err (!%p3083_p10)
}
  0x23   :  { %s3087_s1 = scalar_lea.vmem %s70_s18, 256  ;;  %p3092_p12 = scmp.lt.s32.totalorder %s70_s18, %s70_s18 }
  0x24   :  { %p3088_p11 = scmp.ne.s32.totalorder %s70_s18, %s3087_s1  ;;  %p3093_p13 = scmp.lt.s32.totalorder %s3087_s1, %s3087_s1 }
  0x26   :  { %p3094_p0 = por %p3093_p13, %p3092_p12 }
  0x28   :  { %p3095_p1 = pnand %p3094_p0, %p3088_p11 }
  0x2a   :  { %3098 = shalt.err (!%p3095_p1)
}
  0x2b   :  { %s3408_s19 = smov 128   ;;  %s3409_s30 = smov 8  }
  0x2c   :  { %75 = dma.hbm_to_vmem [thread:$0]  %s4221_s3, 256, %s70_s18, [#allocation10], %s3408_s19, %s3408_s19, %s3409_s30  }
  0x2d   :  { %s3099_s22 = scalar_lea.hbm %s4223_s5, 16 }
  0x2e   :  { %p3100_p2 = scmp.ne.s32.totalorder %s4223_s5, %s3099_s22  ;;  %p3103_p3 = scmp.lt.u32.totalorder %s3099_s22, %s4223_s5 }
  0x30   :  { %p3105_p4 = pnand %p3103_p3, %p3100_p2 }
  0x32   :  { %3108 = shalt.err (!%p3105_p4)
}
  0x33   :  { %s3109_s27 = scalar_lea.vmem %s93_s21, 16  ;;  %s3113_s1 = scalar_lea.vmem %s93_s21, 32 }
  0x34   :  { %p3110_p5 = scmp.ne.s32.totalorder %s93_s21, %s3109_s27  ;;  %p3114_p6 = scmp.lt.s32.totalorder %s93_s21, %s93_s21 }
  0x35   :  { %p3115_p7 = scmp.lt.s32.totalorder %s3113_s1, %s3109_s27 }
  0x37   :  { %p3116_p8 = por %p3115_p7, %p3114_p6 }
  0x39   :  { %p3117_p9 = pnand %p3116_p8, %p3110_p5 }
  0x3b   :  { %3120 = shalt.err (!%p3117_p9)
}
  0x3c   :  { %95 = dma.hbm_to_vmem [thread:$0]  %s4223_s5, 16, %s93_s21, [#allocation13]  }
  0x3d   :  { %s3410_s16 = smov [#allocation15]   ;;  %s3411_s15 = smov [#allocation18]  }
  0x3e   :  { %s114_s17 = sshll.u32 %s3410_s16, 4  ;;  %s134_s20 = sshll.u32 %s3411_s15, 4  ;;  %s115_s17 = int_to_ptr.vmem [resolvable:$true] %s114_s17  ;;  %s135_s20 = int_to_ptr.vmem [resolvable:$true] %s134_s20 }
  0x3f   :  { %s3121_s24 = scalar_lea.hbm %s4225_s7, 16 }
  0x40   :  { %p3122_p10 = scmp.ne.s32.totalorder %s4225_s7, %s3121_s24  ;;  %p3125_p11 = scmp.lt.u32.totalorder %s3121_s24, %s4225_s7 }
  0x42   :  { %p3127_p12 = pnand %p3125_p11, %p3122_p10 }
  0x44   :  { %3130 = shalt.err (!%p3127_p12)
}
  0x45   :  { %s3131_s5 = scalar_lea.vmem %s115_s17, 16  ;;  %s3135_s21 = scalar_lea.vmem %s115_s17, 32 }
  0x46   :  { %p3132_p13 = scmp.ne.s32.totalorder %s115_s17, %s3131_s5  ;;  %p3136_p0 = scmp.lt.s32.totalorder %s115_s17, %s115_s17 }
  0x47   :  { %p3137_p1 = scmp.lt.s32.totalorder %s3135_s21, %s3131_s5 }
  0x49   :  { %p3138_p2 = por %p3137_p1, %p3136_p0 }
  0x4b   :  { %p3139_p3 = pnand %p3138_p2, %p3132_p13 }
  0x4d   :  { %3142 = shalt.err (!%p3139_p3)
}
  0x4e   :  { %117 = dma.hbm_to_vmem [thread:$0]  %s4225_s7, 16, %s115_s17, [#allocation16]  }
  0x4f   :  { %s3143_s22 = scalar_lea.hbm %s4227_s9, 16 }
  0x50   :  { %p3144_p4 = scmp.ne.s32.totalorder %s4227_s9, %s3143_s22  ;;  %p3147_p5 = scmp.lt.u32.totalorder %s3143_s22, %s4227_s9 }
  0x52   :  { %p3149_p6 = pnand %p3147_p5, %p3144_p4 }
  0x54   :  { %3152 = shalt.err (!%p3149_p6)
}
  0x55   :  { %s3153_s27 = scalar_lea.vmem %s135_s20, 16  ;;  %s3157_s1 = scalar_lea.vmem %s135_s20, 32 }
  0x56   :  { %p3154_p7 = scmp.ne.s32.totalorder %s135_s20, %s3153_s27  ;;  %p3158_p8 = scmp.lt.s32.totalorder %s135_s20, %s135_s20 }
  0x57   :  { %p3159_p9 = scmp.lt.s32.totalorder %s3157_s1, %s3153_s27 }
  0x59   :  { %p3160_p10 = por %p3159_p9, %p3158_p8 }
  0x5b   :  { %p3161_p11 = pnand %p3160_p10, %p3154_p7 }
  0x5d   :  { %3164 = shalt.err (!%p3161_p11)
}
  0x5e   :  { %137 = dma.hbm_to_vmem [thread:$0]  %s4227_s9, 16, %s135_s20, [#allocation19]  }
  0x5f   :  { %s3412_s5 = smov [#allocation21]   ;;  %s3413_s3 = smov [#allocation3]  }
  0x60   :  { %s156_s21 = sshll.u32 %s3412_s5, 4  ;;  %s35_s18 = sshll.u32 %s3413_s3, 4  ;;  %s157_s21 = int_to_ptr.vmem [resolvable:$true] %s156_s21  ;;  %s36_s18 = int_to_ptr.vmem [resolvable:$true] %s35_s18 }
  0x61   :  { %s3165_s22 = scalar_lea.hbm %s4229_s11, 16 }
  0x62   :  { %p3166_p12 = scmp.ne.s32.totalorder %s4229_s11, %s3165_s22  ;;  %p3169_p13 = scmp.lt.u32.totalorder %s3165_s22, %s4229_s11 }
  0x64   :  { %p3171_p0 = pnand %p3169_p13, %p3166_p12 }
  0x66   :  { %3174 = shalt.err (!%p3171_p0)
}
  0x67   :  { %s3175_s9 = scalar_lea.vmem %s157_s21, 16  ;;  %s3179_s20 = scalar_lea.vmem %s157_s21, 32 }
  0x68   :  { %p3176_p1 = scmp.ne.s32.totalorder %s157_s21, %s3175_s9  ;;  %p3180_p2 = scmp.lt.s32.totalorder %s157_s21, %s157_s21 }
  0x69   :  { %p3181_p3 = scmp.lt.s32.totalorder %s3179_s20, %s3175_s9 }
  0x6b   :  { %p3182_p4 = por %p3181_p3, %p3180_p2 }
  0x6d   :  { %p3183_p5 = pnand %p3182_p4, %p3176_p1 }
  0x6f   :  { %3186 = shalt.err (!%p3183_p5)
}
  0x70   :  { %159 = dma.hbm_to_vmem [thread:$0]  %s4229_s11, 16, %s157_s21, [#allocation22]  }
  0x71   :  { %s3187_s5 = scalar_lea.hbm %s4218_s0, 256 }
  0x72   :  { %p3188_p6 = scmp.ne.s32.totalorder %s4218_s0, %s3187_s5  ;;  %p3191_p7 = scmp.lt.u32.totalorder %s3187_s5, %s4218_s0 }
  0x74   :  { %p3193_p8 = pnand %p3191_p7, %p3188_p6 }
  0x76   :  { %3196 = shalt.err (!%p3193_p8)
}
  0x77   :  { %s3197_s23 = scalar_lea.vmem %s36_s18, 256  ;;  %p3202_p10 = scmp.lt.s32.totalorder %s36_s18, %s36_s18 }
  0x78   :  { %p3198_p9 = scmp.ne.s32.totalorder %s36_s18, %s3197_s23  ;;  %p3203_p11 = scmp.lt.s32.totalorder %s3197_s23, %s3197_s23 }
  0x7a   :  { %p3204_p12 = por %p3203_p11, %p3202_p10 }
  0x7c   :  { %p3205_p13 = pnand %p3204_p12, %p3198_p9 }
  0x7e   :  { %3208 = shalt.err (!%p3205_p13)
}
  0x7f   :  { %41 = dma.hbm_to_vmem [thread:$0]  %s4218_s0, 256, %s36_s18, [#allocation4], %s3408_s19, %s3408_s19, %s3409_s30  }
  0x80   :  { %s3414_s24 = smov [#allocation8]   ;;  %s3415_s26 = smov [#allocation11]  }
  0x81   :  { %s60_s25 = sshll.u32 %s3414_s24, 4  ;;  %s82_s9 = sshll.u32 %s3415_s26, 4  ;;  %s61_s25 = int_to_ptr.vmem [resolvable:$true] %s60_s25  ;;  %s83_s9 = int_to_ptr.vmem [resolvable:$true] %s82_s9 }
  0x82   :  { %s3209_s1 = scalar_lea.hbm %s4220_s2, 32 }
  0x83   :  { %p3210_p0 = scmp.ne.s32.totalorder %s4220_s2, %s3209_s1  ;;  %p3213_p1 = scmp.lt.u32.totalorder %s3209_s1, %s4220_s2 }
  0x85   :  { %p3215_p2 = pnand %p3213_p1, %p3210_p0 }
  0x87   :  { %3218 = shalt.err (!%p3215_p2)
}
  0x88   :  { %s3219_s0 = scalar_lea.vmem %s61_s25, 32  ;;  %p3224_p4 = scmp.lt.s32.totalorder %s61_s25, %s61_s25 }
  0x89   :  { %p3220_p3 = scmp.ne.s32.totalorder %s61_s25, %s3219_s0  ;;  %p3225_p5 = scmp.lt.s32.totalorder %s3219_s0, %s3219_s0 }
  0x8b   :  { %p3226_p6 = por %p3225_p5, %p3224_p4 }
  0x8d   :  { %p3227_p7 = pnand %p3226_p6, %p3220_p3 }
  0x8f   :  { %3230 = shalt.err (!%p3227_p7)
}
  0x90   :  { %63 = dma.hbm_to_vmem [thread:$0]  %s4220_s2, 32, %s61_s25, [#allocation7]  }
  0x91   :  { %s3231_s23 = scalar_lea.hbm %s4222_s4, 128 }
  0x92   :  { %p3232_p8 = scmp.ne.s32.totalorder %s4222_s4, %s3231_s23  ;;  %p3235_p9 = scmp.lt.u32.totalorder %s3231_s23, %s4222_s4 }
  0x94   :  { %p3237_p10 = pnand %p3235_p9, %p3232_p8 }
  0x96   :  { %3240 = shalt.err (!%p3237_p10)
}
  0x97   :  { %s3241_s20 = scalar_lea.vmem %s83_s9, 128  ;;  %p3246_p12 = scmp.lt.s32.totalorder %s83_s9, %s83_s9 }
  0x98   :  { %p3242_p11 = scmp.ne.s32.totalorder %s83_s9, %s3241_s20  ;;  %p3247_p13 = scmp.lt.s32.totalorder %s3241_s20, %s3241_s20 }
  0x9a   :  { %p3248_p0 = por %p3247_p13, %p3246_p12 }
  0x9c   :  { %p3249_p1 = pnand %p3248_p0, %p3242_p11 }
  0x9e   :  { %3252 = shalt.err (!%p3249_p1)
}
  0x9f   :  { %85 = dma.hbm_to_vmem [thread:$0]  %s4222_s4, 128, %s83_s9, [#allocation10]  }
  0xa0   :  { %s3416_s27 = smov [#allocation14]   ;;  %s3417_s7 = smov [#allocation17]  }
  0xa1   :  { %s101_s1 = sshll.u32 %s3416_s27, 4  ;;  %s124_s17 = sshll.u32 %s3417_s7, 4  ;;  %s102_s1 = int_to_ptr.vmem [resolvable:$true] %s101_s1  ;;  %s125_s17 = int_to_ptr.vmem [resolvable:$true] %s124_s17 }
  0xa2   :  { %s3253_s0 = scalar_lea.hbm %s4224_s6, 256 }
  0xa3   :  { %p3254_p2 = scmp.ne.s32.totalorder %s4224_s6, %s3253_s0  ;;  %p3257_p3 = scmp.lt.u32.totalorder %s3253_s0, %s4224_s6 }
  0xa5   :  { %p3259_p4 = pnand %p3257_p3, %p3254_p2 }
  0xa7   :  { %3262 = shalt.err (!%p3259_p4)
}
  0xa8   :  { %s3263_s4 = scalar_lea.vmem %s102_s1, 256  ;;  %p3268_p6 = scmp.lt.s32.totalorder %s102_s1, %s102_s1 }
  0xa9   :  { %p3264_p5 = scmp.ne.s32.totalorder %s102_s1, %s3263_s4  ;;  %p3269_p7 = scmp.lt.s32.totalorder %s3263_s4, %s3263_s4 }
  0xab   :  { %p3270_p8 = por %p3269_p7, %p3268_p6 }
  0xad   :  { %p3271_p9 = pnand %p3270_p8, %p3264_p5 }
  0xaf   :  { %3274 = shalt.err (!%p3271_p9)
}
  0xb0   :  { %107 = dma.hbm_to_vmem [thread:$0]  %s4224_s6, 256, %s102_s1, [#allocation13], %s3404_s28, %s3404_s28, %s3405_s29  }
  0xb1   :  { %s3275_s24 = scalar_lea.hbm %s4226_s8, 16 }
  0xb2   :  { %p3276_p10 = scmp.ne.s32.totalorder %s4226_s8, %s3275_s24  ;;  %p3279_p11 = scmp.lt.u32.totalorder %s3275_s24, %s4226_s8 }
  0xb4   :  { %p3281_p12 = pnand %p3279_p11, %p3276_p10 }
  0xb6   :  { %3284 = shalt.err (!%p3281_p12)
}
  0xb7   :  { %s3285_s27 = scalar_lea.vmem %s125_s17, 16  ;;  %s3289_s7 = scalar_lea.vmem %s125_s17, 32 }
  0xb8   :  { %p3286_p13 = scmp.ne.s32.totalorder %s125_s17, %s3285_s27  ;;  %p3290_p0 = scmp.lt.s32.totalorder %s125_s17, %s125_s17 }
  0xb9   :  { %p3291_p1 = scmp.lt.s32.totalorder %s3289_s7, %s3285_s27 }
  0xbb   :  { %p3292_p2 = por %p3291_p1, %p3290_p0 }
  0xbd   :  { %p3293_p3 = pnand %p3292_p2, %p3286_p13 }
  0xbf   :  { %3296 = shalt.err (!%p3293_p3)
}
  0xc0   :  { %127 = dma.hbm_to_vmem [thread:$0]  %s4226_s8, 16, %s125_s17, [#allocation16]  }
  0xc1   :  { %s3418_s1 = smov [#allocation20]   ;;  %s3419_s3 = smov [#allocation23]  }
  0xc2   :  { %s143_s5 = sshll.u32 %s3418_s1, 4  ;;  %s165_s0 = sshll.u32 %s3419_s3, 4  ;;  %s144_s5 = int_to_ptr.vmem [resolvable:$true] %s143_s5  ;;  %s166_s0 = int_to_ptr.vmem [resolvable:$true] %s165_s0 }
  0xc3   :  { %s3297_s15 = scalar_lea.hbm %s4228_s10, 1536 }
  0xc4   :  { %p3298_p4 = scmp.ne.s32.totalorder %s4228_s10, %s3297_s15  ;;  %p3301_p5 = scmp.lt.u32.totalorder %s3297_s15, %s4228_s10 }
  0xc6   :  { %p3303_p6 = pnand %p3301_p5, %p3298_p4 }
  0xc8   :  { %3306 = shalt.err (!%p3303_p6)
}
  0xc9   :  { %s3307_s8 = scalar_lea.vmem %s144_s5, 1536  ;;  %p3312_p8 = scmp.lt.s32.totalorder %s144_s5, %s144_s5 }
  0xca   :  { %p3308_p7 = scmp.ne.s32.totalorder %s144_s5, %s3307_s8  ;;  %p3313_p9 = scmp.lt.s32.totalorder %s3307_s8, %s3307_s8 }
  0xcc   :  { %p3314_p10 = por %p3313_p9, %p3312_p8 }
  0xce   :  { %p3315_p11 = pnand %p3314_p10, %p3308_p7 }
  0xd0   :  { %3318 = shalt.err (!%p3315_p11)
}
  0xd1   :  { %149 = dma.hbm_to_vmem [thread:$0]  %s4228_s10, 1536, %s144_s5, [#allocation19], %s3408_s19, %s3408_s19, %s3409_s30  }
  0xd2   :  { %s3319_s26 = scalar_lea.hbm %s4230_s12, 768 }
  0xd3   :  { %p3320_p12 = scmp.ne.s32.totalorder %s4230_s12, %s3319_s26  ;;  %p3323_p13 = scmp.lt.u32.totalorder %s3319_s26, %s4230_s12 }
  0xd5   :  { %p3325_p0 = pnand %p3323_p13, %p3320_p12 }
  0xd7   :  { %3328 = shalt.err (!%p3325_p0)
}
  0xd8   :  { %s3329_s7 = scalar_lea.vmem %s166_s0, 768  ;;  %p3334_p2 = scmp.lt.s32.totalorder %s166_s0, %s166_s0 }
  0xd9   :  { %p3330_p1 = scmp.ne.s32.totalorder %s166_s0, %s3329_s7  ;;  %p3335_p3 = scmp.lt.s32.totalorder %s3329_s7, %s3329_s7 }
  0xdb   :  { %p3336_p4 = por %p3335_p3, %p3334_p2 }
  0xdd   :  { %p3337_p5 = pnand %p3336_p4, %p3330_p1 }
  0xdf   :  { %3340 = shalt.err (!%p3337_p5)
}
  0xe0   :  { %171 = dma.hbm_to_vmem [thread:$0]  %s4230_s12, 768, %s166_s0, [#allocation22], %s3408_s19, %s3408_s19, %s3409_s30  }
  0xe1   :  { %s3420_s29 = smov [#allocation24]   ;;  %s3341_s18 = scalar_lea.hbm %s4231_s13, 16 }
  0xe2   :  { %s178_s1 = sshll.u32 %s3420_s29, 4  ;;  %p3342_p6 = scmp.ne.s32.totalorder %s4231_s13, %s3341_s18  ;;  %s179_s1 = int_to_ptr.vmem [resolvable:$true] %s178_s1 }
  0xe3   :  { %p3345_p7 = scmp.lt.u32.totalorder %s3341_s18, %s4231_s13 }
  0xe5   :  { %p3347_p8 = pnand %p3345_p7, %p3342_p6 }
  0xe7   :  { %3350 = shalt.err (!%p3347_p8)
}
  0xe8   :  { %s3351_s9 = scalar_lea.vmem %s179_s1, 16  ;;  %s3355_s12 = scalar_lea.vmem %s179_s1, 32 }
  0xe9   :  { %p3352_p9 = scmp.ne.s32.totalorder %s179_s1, %s3351_s9  ;;  %p3356_p10 = scmp.lt.s32.totalorder %s179_s1, %s179_s1 }
  0xea   :  { %p3357_p11 = scmp.lt.s32.totalorder %s3355_s12, %s3351_s9 }
  0xec   :  { %p3358_p12 = por %p3357_p11, %p3356_p10 }
  0xee   :  { %p3359_p13 = pnand %p3358_p12, %p3352_p9 }
  0xf0   :  { %3362 = shalt.err (!%p3359_p13)
}
  0xf1   :  { %181 = dma.hbm_to_vmem [thread:$0]  %s4231_s13, 16, %s179_s1, [#allocation25]  }
  0xf2   :  { %3385 = dma.done.wait [#allocation4], 256  }
  0xf3   :  { %3386 = vsyncadd [#allocation4], 4294967040 }
  0xf4   :  { %3387 = dma.done.wait [#allocation7], 160  }
  0xf5   :  { %3388 = vsyncadd [#allocation7], 4294967136 }
  0xf6   :  { %3389 = dma.done.wait [#allocation10], 384  }
  0xf7   :  { %3390 = vsyncadd [#allocation10], 4294966912 }
  0xf8   :  { %3391 = dma.done.wait [#allocation13], 272  }
  0xf9   :  { %3392 = vsyncadd [#allocation13], 4294967024 }
  0xfa   :  { %3393 = dma.done.wait [#allocation16], 32  }
  0xfb   :  { %3394 = vsyncadd [#allocation16], 4294967264 }
  0xfc   :  { %3395 = dma.done.wait [#allocation19], 1552  }
  0xfd   :  { %3396 = vsyncadd [#allocation19], 4294965744 }
  0xfe   :  { %3397 = dma.done.wait [#allocation22], 784  }
  0xff   :  { %3398 = vsyncadd [#allocation22], 4294966512 }
 0x100   :  { %3399 = dma.done.wait [#allocation25], 16  }
 0x101   :  { %3400 = vsyncadd [#allocation25], 4294967280  ;;  %v3421_v0 = vmov 0.0   ;;  %vm257_vm0 = vcmask 64512   ;;  %v249_v1 = vld [vmem:[#allocation11] sm:$0xff]  ;;  %v247_v2 = vld [vmem:[#allocation3] sm:$0xff]  ;;  %v490_v26 = vlaneseq }
 0x102   :  { %2670 = vmatprep.subr.bf16.mxu1 %v3421_v0  ;;  %v248_v3 = vld [vmem:[#allocation3 + $0x8] sm:$0xff]  ;;  %2665 = vmatprep.subr.mxu0 %v249_v1  ;;  %v3695_v4 = vld [vmem:[#allocation14] sm:$0xff]   ;;  %v3699_v5 = vld [vmem:[#allocation14 + $0x8] sm:$0xff]   ;;  %vm3422_vm1 = vmmov 0   ;;  %vm352_vm2 = vcmask 261120   ;;  %v3423_v12 = vmov 0.0|0.0  }
 0x103   :  { %2667 = vmatprep.mubr.msk.f32.mxu0 %vm257_vm0, %v247_v2  ;;  %2666 = vmatpush3.msra.mxu0 %v249_v1  ;;  %v2524_v6 = vld [vmem:[#allocation12] ss:$0 sm:$0xff]  ;;  %v3721_v13 = vld [vmem:[#allocation17] ss:$0 sm:$0xff]  ;;  %vm3726_vm3 = vmpackc.low %vm352_vm2, %vm352_vm2  ;;  %v3424_v25 = vmov 0   ;;  %v491_v28 = vshrl.u32 %v490_v26, 7 }
 0x104   :  { %2668 = vmatmul.mubr.msk.f32.vlgmr.msra.gmra.mrb[0].mxu0 %vm257_vm0, %v248_v3  ;;  %2671 = vmatpush3.bf16.msra.mxu1 %v3695_v4  ;;  %v3736_v24 = vld [vmem:[#allocation15] sm:$0x1]  ;;  %v230_v27 = vld [vmem:[#allocation6] sm:$0xf]  ;;  %v231_v29 = vld [vmem:[#allocation6 + $0x4] sm:$0xf] }
 0x105   :  { %2672 = vmatprep.subr.bf16.mxu1 %v3421_v0  ;;  %2674 = vmatprep.mubr.msk.bf16.mxu1 %vm3422_vm1, %v3421_v0  ;;  %vm232_vm4 = vcmp.gt.bf16.partialorder %v230_v27, 0  ;;  %v3745_v31 = vsub.s32 0, %v491_v28  ;;  %vm233_vm5 = vcmp.gt.bf16.partialorder %v231_v29, 0  ;;  %vm510_vm9 = vcmask 130048  }
 0x106   :  { %2682 = vmatprep.mubr.msk.f32.mxu0 %vm3422_vm1, %v3421_v0  ;;  %2887 = vmatprep.subr.bf16.mxu0 %v3423_v12  ;;  %v502_v32 = vsel %vm232_vm4, 65537, %v3424_v25  ;;  %v503_v35 = vsel %vm233_vm5, 65537, %v3424_v25 }
 0x107   :  { %2974 = vset.pattern.permute.xlu1 %v3424_v25  ;;  %2975 = vset.pattern.permute.xlu0 %v3424_v25  ;;  %v504_v34 = vunpack.c.l.b16 %v502_v32  ;;  %v505_v41 = vunpack.c.l.b16 %v503_v35 }
 0x108   :  { %2673 = vmatpush3.bf16.msra.mxu1 %v3699_v5 }
 0x109   :  { %2691 = vmatprep.subr.bf16.mxu1 %v3421_v0  ;;  %vm3750_vm6 = vcmp.ne.s32.totalorder %v504_v34, 0  ;;  %vm3754_vm10 = vcmp.ne.s32.totalorder %v505_v41, 0 }
 0x1d7   :  { %v2669_v7 = vpop.f32.mrb[0].mxu0 }
 0x1d8   :  { %v3707_v8 = vadd.f32 %v2669_v7, %v2524_v6  ;;  %v330_v9 = vpop.f32.mrb[1].mxu0 }
 0x1d9   :  { %v3709_v10 = vadd.f32 %v2524_v6, %v330_v9 }
 0x1db   :  { %v339_v11 = vpack.c.bf16 %v3707_v8, %v3709_v10 }
 0x1dd   :  { %2675 = vmatmul.mubr.msk.bf16.vlgmr.msra.gmra.mrb[0].mxu1 %vm352_vm2, %v339_v11 }
 0x1de   :  { %2692 = vmatpush3.bf16.msra.mxu1 %v3695_v4  ;;  %2695 = vmatprep.mubr.msk.bf16.mxu1 %vm3422_vm1, %v3421_v0 }
 0x1df   :  { %2693 = vmatprep.subr.bf16.mxu1 %v3421_v0 }
 0x1e2   :  { %2694 = vmatpush3.bf16.msra.mxu1 %v3699_v5 }
 0x1e3   :  { %2891 = vmatprep.subr.bf16.mxu1 %v3423_v12 }
 0x2b0   :  { %v390_v14 = vpop.f32.mrb[0].mxu1 }
 0x2b1   :  { %v2676_v15 = vpop.f32.mrb[1].mxu1  ;;  %v403_v16 = vmul.f32 %v3721_v13, %v390_v14 }
 0x2b2   :  { %v393_v17 = vpop.f32.mrb[2].mxu1 }
 0x2b3   :  { %v404_v19 = vmul.f32 %v3721_v13, %v393_v17  ;;  %v2888_v20 = vpack.c.bf16 %v393_v17, %v390_v14  ;;  %v2677_v21 = vpop.f32.mrb[3].mxu1  ;;  %v405_v22 = vsel %vm352_vm2, %v403_v16, 0.0  ;;  %v3777_v16 = vld [vmem:[#allocation18] ss:$0 sm:$0xff] }
 0x2b4   :  { %406 = vadd.xlane.f32.xlu0 %v405_v22  ;;  %v3783_v21 = vstv %s4232_s14  ;;  %s3426_s14 = smov 32  }
 0x2b5   :  { %2890 = vmatpush3.bf16.xpose.msk.msra.mxu0 %vm3726_vm3, %v2888_v20  ;;  %v408_v23 = vsel %vm352_vm2, %v404_v19, 0.0 }
 0x2b6   :  { %2685 = vmatprep.subr.bf16.mxu0 %v3421_v0 }
 0x2b8   :  { %409 = vadd.xlane.f32.xlu0 %v408_v23 }
 0x2bc   :  { %2683 = vmatmul.mubr.msk.f32.vlgmr.msra.gmra.mrb[2].mxu0 %vm352_vm2, %v3736_v24 }
 0x2bd   :  { %2686 = vmatpush3.bf16.msra.mxu0 %v2888_v20  ;;  %2687 = vmatprep.mubr.msk.bf16.mxu0 %vm3422_vm1, %v3421_v0 }
 0x2be   :  { %2712 = vmatprep.subr.bf16.mxu0 %v3421_v0 }
 0x341   :  { %v407_v30 = vpop.xlane.xlu0 %406 }
 0x345   :  { %v410_v38 = vpop.xlane.xlu0 %409 }
 0x38f   :  { %v486_v33 = vpop.f32.mrb[2].mxu0 }
 0x390   :  { %v493_v36 = vrot.slane %v486_v33, %v3745_v31  ;;  %v2684_v37 = vpop.f32.mrb[3].mxu0 }
 0x392   :  { %v494_v39 = vadd.f32 %v493_v36, %v407_v30  ;;  %v495_v40 = vadd.f32 %v493_v36, %v410_v38 }
 0x394   :  { %vm496_vm7 = vcmp.gt.f32.partialorder %v494_v39, 0.0  ;;  %v498_v43 = vmul.f32 0.2, %v494_v39  ;;  %vm497_vm8 = vcmp.gt.f32.partialorder %v495_v40, 0.0  ;;  %v499_v44 = vmul.f32 0.2, %v495_v40 }
 0x396   :  { %v500_v45 = vsel %vm496_vm7, %v494_v39, %v498_v43  ;;  %v501_v46 = vsel %vm497_vm8, %v495_v40, %v499_v44 }
 0x397   :  { %v508_v48 = vsel %vm3750_vm6, %v500_v45, -1e+30  ;;  %v509_v50 = vsel %vm3754_vm10, %v501_v46, -1e+30 }
 0x398   :  { %v511_v49 = vsel %vm510_vm9, %v508_v48, -inf  ;;  %v514_v51 = vsel %vm510_vm9, %v509_v50, -inf }
 0x399   :  { %512 = vmax.xlane.f32.xlu1 %v511_v49 }
 0x39d   :  { %515 = vmax.xlane.f32.xlu1 %v514_v51 }
 0x426   :  { %v513_v52 = vpop.xlane.xlu1 %512 }
 0x427   :  { %v517_v53 = vsub.f32 %v508_v48, %v513_v52 }
 0x429   :  { %v519_v54 = vmul.f32 1.442695, %v517_v53 }
 0x42a   :  { %v516_v55 = vpop.xlane.xlu1 %515 }
 0x42b   :  { %2980 = vpow2.f32 %v519_v54  ;;  %v518_v56 = vsub.f32 %v509_v50, %v516_v55 }
 0x42d   :  { %v521_v57 = vmul.f32 1.442695, %v518_v56 }
 0x42f   :  { %2982 = vpow2.f32 %v521_v57 }
 0x435   :  { %v2981_v58 = vpop.eup %2980 }
 0x436   :  { %v523_v59 = vsel %vm3750_vm6, %v2981_v58, 0.0 }
 0x437   :  { %v525_v60 = vsel %vm510_vm9, %v523_v59, 0.0 }
 0x438   :  { %526 = vadd.xlane.f32.xlu0 %v525_v60 }
 0x439   :  { %v2983_v61 = vpop.eup %2982 }
 0x43a   :  { %v524_v62 = vsel %vm3754_vm10, %v2983_v61, 0.0 }
 0x43b   :  { %v528_v63 = vsel %vm510_vm9, %v524_v62, 0.0 }
 0x43c   :  { %529 = vadd.xlane.f32.xlu1 %v528_v63 }
 0x4c5   :  { %v527_v1 = vpop.xlane.xlu0 %526 }
 0x4c6   :  { %v531_v2 = vmax.f32 %v527_v1, 1e-20 }
 0x4c8   :  { %2984 = vrcp.f32 %v531_v2 }
 0x4c9   :  { %v530_v3 = vpop.xlane.xlu1 %529 }
 0x4ca   :  { %v532_v6 = vmax.f32 %v530_v3, 1e-20 }
 0x4cc   :  { %2986 = vrcp.f32 %v532_v6 }
 0x4d2   :  { %v2985_v7 = vpop.eup %2984 }
 0x4d3   :  { %v535_v11 = vmul.f32 %v2985_v7, %v523_v59 }
 0x4d6   :  { %v2987_v9 = vpop.eup %2986 }
 0x4d7   :  { %v536_v14 = vmul.f32 %v2987_v9, %v524_v62 }
 0x4d9   :  { %v537_v15 = vpack.c.bf16 %v536_v14, %v535_v11 }
 0x4db   :  { %2688 = vmatmul.mubr.msk.bf16.vlgmr.msra.gmra.mrb[4].mxu0 %vm510_vm9, %v537_v15 }
 0x4dc   :  { %2713 = vmatpush3.bf16.msra.mxu0 %v3695_v4  ;;  %2716 = vmatprep.mubr.msk.bf16.mxu0 %vm3422_vm1, %v3421_v0 }
 0x4dd   :  { %2714 = vmatprep.subr.bf16.mxu0 %v3421_v0 }
 0x4e0   :  { %2715 = vmatpush3.bf16.msra.mxu0 %v3699_v5 }
 0x4e1   :  { %2733 = vmatprep.subr.bf16.mxu0 %v3421_v0 }
 0x5ae   :  { %v576_v17 = vpop.f32.mrb[4].mxu0 }
 0x5af   :  { %v577_v19 = vadd.f32 %v3777_v16, %v576_v17  ;;  %v2689_v20 = vpop.f32.mrb[5].mxu0 }
 0x5b0   :  { %v579_v22 = vpop.f32.mrb[6].mxu0 }
 0x5b1   :  { %v583_v23 = vsub.f32 %v577_v19, %v3709_v10  ;;  %v580_v26 = vadd.f32 %v3777_v16, %v579_v22  ;;  %v2690_v27 = vpop.f32.mrb[7].mxu0 }
 0x5b3   :  { %v3788_v28 = vmul.f32 %v3783_v21, %v583_v23  ;;  %v584_v29 = vsub.f32 %v580_v26, %v3707_v8 }
 0x5b5   :  { %v588_v30 = vmul.f32 0.05, %v3788_v28  ;;  %v3793_v32 = vmul.f32 %v3783_v21, %v584_v29 }
 0x5b7   :  { %v589_v33 = vmul.f32 0.05, %v3793_v32  ;;  %v3797_v34 = vadd.f32 %v588_v30, %v3709_v10 }
 0x5b9   :  { %v3800_v35 = vadd.f32 %v589_v33, %v3707_v8 }
 0x5bb   :  { %v592_v36 = vpack.c.bf16 %v3800_v35, %v3797_v34 }
 0x5bd   :  { %2696 = vmatmul.mubr.msk.bf16.vlgmr.msra.gmra.mrb[4].mxu1 %vm352_vm2, %v592_v36 }
 0x5be   :  { %2703 = vmatprep.mubr.msk.f32.mxu1 %vm3422_vm1, %v3421_v0 }
 0x690   :  { %v630_v37 = vpop.f32.mrb[4].mxu1 }
 0x691   :  { %v637_v38 = vmul.f32 %v3721_v13, %v630_v37  ;;  %v2697_v39 = vpop.f32.mrb[5].mxu1 }
 0x692   :  { %v633_v40 = vpop.f32.mrb[6].mxu1 }
 0x693   :  { %v638_v41 = vmul.f32 %v3721_v13, %v633_v40  ;;  %v2892_v43 = vpack.c.bf16 %v633_v40, %v630_v37  ;;  %v2698_v44 = vpop.f32.mrb[7].mxu1  ;;  %v639_v45 = vsel %vm352_vm2, %v637_v38, 0.0 }
 0x694   :  { %640 = vadd.xlane.f32.xlu0 %v639_v45 }
 0x695   :  { %2894 = vmatpush3.bf16.xpose.msk.msra.mxu1 %vm3726_vm3, %v2892_v43  ;;  %v642_v46 = vsel %vm352_vm2, %v638_v41, 0.0 }
 0x696   :  { %643 = vadd.xlane.f32.xlu1 %v642_v46  ;;  %2706 = vmatprep.subr.bf16.mxu1 %v3421_v0 }
 0x69c   :  { %2704 = vmatmul.mubr.msk.f32.vlgmr.msra.gmra.mrb[8].mxu1 %vm352_vm2, %v3736_v24 }
 0x69d   :  { %2707 = vmatpush3.bf16.msra.mxu1 %v2892_v43  ;;  %2708 = vmatprep.mubr.msk.bf16.mxu1 %vm3422_vm1, %v3421_v0 }
 0x69e   :  { %2895 = vmatprep.subr.bf16.mxu1 %v3423_v12 }
 0x721   :  { %v641_v51 = vpop.xlane.xlu0 %640 }
 0x723   :  { %v644_v52 = vpop.xlane.xlu1 %643 }
 0x76f   :  { %v717_v48 = vpop.f32.mrb[8].mxu1 }
 0x770   :  { %v724_v49 = vrot.slane %v717_v48, %v3745_v31  ;;  %v2705_v50 = vpop.f32.mrb[9].mxu1 }
 0x772   :  { %v725_v53 = vadd.f32 %v724_v49, %v641_v51  ;;  %v726_v54 = vadd.f32 %v724_v49, %v644_v52 }
 0x774   :  { %vm728_vm11 = vcmp.gt.f32.partialorder %v726_v54, 0.0  ;;  %v730_v55 = vmul.f32 0.2, %v726_v54  ;;  %vm727_vm12 = vcmp.gt.f32.partialorder %v725_v53, 0.0  ;;  %v729_v56 = vmul.f32 0.2, %v725_v53 }
 0x776   :  { %v732_v57 = vsel %vm728_vm11, %v726_v54, %v730_v55  ;;  %v731_v58 = vsel %vm727_vm12, %v725_v53, %v729_v56 }
 0x777   :  { %v734_v59 = vsel %vm3754_vm10, %v732_v57, -1e+30  ;;  %v733_v60 = vsel %vm3750_vm6, %v731_v58, -1e+30 }
 0x778   :  { %v738_v61 = vsel %vm510_vm9, %v734_v59, -inf  ;;  %v735_v62 = vsel %vm510_vm9, %v733_v60, -inf }
 0x779   :  { %739 = vmax.xlane.f32.xlu1 %v738_v61  ;;  %736 = vmax.xlane.f32.xlu0 %v735_v62 }
 0x806   :  { %v740_v63 = vpop.xlane.xlu1 %739  ;;  %v737_v1 = vpop.xlane.xlu0 %736 }
 0x807   :  { %v742_v2 = vsub.f32 %v734_v59, %v740_v63  ;;  %v741_v3 = vsub.f32 %v733_v60, %v737_v1 }
 0x809   :  { %v745_v6 = vmul.f32 1.442695, %v742_v2  ;;  %v743_v7 = vmul.f32 1.442695, %v741_v3 }
 0x80b   :  { %2988 = vpow2.f32 %v745_v6 }
 0x80c   :  { %2990 = vpow2.f32 %v743_v7 }
 0x815   :  { %v2989_v9 = vpop.eup %2988 }
 0x816   :  { %v2991_v11 = vpop.eup %2990  ;;  %v748_v14 = vsel %vm3754_vm10, %v2989_v9, 0.0 }
 0x817   :  { %v752_v15 = vsel %vm510_vm9, %v748_v14, 0.0  ;;  %v747_v17 = vsel %vm3750_vm6, %v2991_v11, 0.0 }
 0x818   :  { %753 = vadd.xlane.f32.xlu1 %v752_v15  ;;  %v749_v19 = vsel %vm510_vm9, %v747_v17, 0.0 }
 0x819   :  { %750 = vadd.xlane.f32.xlu0 %v749_v19 }
 0x8a5   :  { %v754_v20 = vpop.xlane.xlu1 %753 }
 0x8a6   :  { %v756_v22 = vmax.f32 %v754_v20, 1e-20  ;;  %v751_v23 = vpop.xlane.xlu0 %750 }
 0x8a7   :  { %v755_v26 = vmax.f32 %v751_v23, 1e-20 }
 0x8a8   :  { %2992 = vrcp.f32 %v756_v22 }
 0x8a9   :  { %2994 = vrcp.f32 %v755_v26 }
 0x8b2   :  { %v2993_v27 = vpop.eup %2992 }
 0x8b3   :  { %v2995_v29 = vpop.eup %2994  ;;  %v760_v30 = vmul.f32 %v2993_v27, %v748_v14 }
 0x8b4   :  { %v759_v33 = vmul.f32 %v2995_v29, %v747_v17 }
 0x8b6   :  { %v761_v36 = vpack.c.bf16 %v760_v30, %v759_v33 }
 0x8b8   :  { %2709 = vmatmul.mubr.msk.bf16.vlgmr.msra.gmra.mrb[12].mxu1 %vm510_vm9, %v761_v36 }
 0x8b9   :  { %2724 = vmatprep.mubr.msk.f32.mxu1 %vm3422_vm1, %v3421_v0 }
 0x98b   :  { %v800_v37 = vpop.f32.mrb[12].mxu1 }
 0x98c   :  { %v801_v38 = vadd.f32 %v3777_v16, %v800_v37  ;;  %v2710_v39 = vpop.f32.mrb[13].mxu1 }
 0x98d   :  { %v803_v40 = vpop.f32.mrb[14].mxu1 }
 0x98e   :  { %v807_v41 = vsub.f32 %v801_v38, %v3797_v34  ;;  %v804_v43 = vadd.f32 %v3777_v16, %v803_v40  ;;  %v2711_v44 = vpop.f32.mrb[15].mxu1 }
 0x990   :  { %v3839_v45 = vmul.f32 %v807_v41, %v3783_v21  ;;  %v808_v46 = vsub.f32 %v804_v43, %v3800_v35 }
 0x992   :  { %v811_v48 = vmul.f32 0.05, %v3839_v45  ;;  %v3844_v49 = vmul.f32 %v808_v46, %v3783_v21 }
 0x994   :  { %v812_v50 = vmul.f32 0.05, %v3844_v49  ;;  %v3848_v51 = vadd.f32 %v811_v48, %v3709_v10 }
 0x996   :  { %v3851_v34 = vadd.f32 %v812_v50, %v3707_v8 }
 0x998   :  { %v815_v52 = vpack.c.bf16 %v3851_v34, %v3848_v51 }
 0x99a   :  { %2717 = vmatmul.mubr.msk.bf16.vlgmr.msra.gmra.mrb[8].mxu0 %vm352_vm2, %v815_v52 }
 0x99b   :  { %2734 = vmatpush3.bf16.msra.mxu0 %v3695_v4  ;;  %2737 = vmatprep.mubr.msk.bf16.mxu0 %vm3422_vm1, %v3421_v0 }
 0x99c   :  { %2735 = vmatprep.subr.bf16.mxu0 %v3421_v0 }
 0x99f   :  { %2736 = vmatpush3.bf16.msra.mxu0 %v3699_v5 }
 0x9a0   :  { %2748 = vmatprep.subr.bf16.mxu0 %v3421_v0 }
 0xa6d   :  { %v853_v35 = vpop.f32.mrb[8].mxu0 }
 0xa6e   :  { %v860_v53 = vmul.f32 %v3721_v13, %v853_v35  ;;  %v2718_v54 = vpop.f32.mrb[9].mxu0 }
 0xa6f   :  { %v856_v55 = vpop.f32.mrb[10].mxu0 }
 0xa70   :  { %v861_v56 = vmul.f32 %v3721_v13, %v856_v55  ;;  %v2896_v57 = vpack.c.bf16 %v856_v55, %v853_v35  ;;  %v2719_v58 = vpop.f32.mrb[11].mxu0  ;;  %v862_v59 = vsel %vm352_vm2, %v860_v53, 0.0 }
 0xa71   :  { %863 = vadd.xlane.f32.xlu0 %v862_v59 }
 0xa72   :  { %2898 = vmatpush3.bf16.xpose.msk.msra.mxu1 %vm3726_vm3, %v2896_v57  ;;  %v865_v60 = vsel %vm352_vm2, %v861_v56, 0.0 }
 0xa73   :  { %866 = vadd.xlane.f32.xlu1 %v865_v60  ;;  %2727 = vmatprep.subr.bf16.mxu1 %v3421_v0 }
 0xa79   :  { %2725 = vmatmul.mubr.msk.f32.vlgmr.msra.gmra.mrb[10].mxu1 %vm352_vm2, %v3736_v24 }
 0xa7a   :  { %2728 = vmatpush3.bf16.msra.mxu1 %v2896_v57  ;;  %2729 = vmatprep.mubr.msk.bf16.mxu1 %vm3422_vm1, %v3421_v0 }
 0xa7b   :  { %2899 = vmatprep.subr.bf16.mxu1 %v3423_v12 }
 0xafe   :  { %v864_v1 = vpop.xlane.xlu0 %863 }
 0xb00   :  { %v867_v2 = vpop.xlane.xlu1 %866 }
 0xb4c   :  { %v940_v61 = vpop.f32.mrb[10].mxu1 }
 0xb4d   :  { %v947_v62 = vrot.slane %v940_v61, %v3745_v31  ;;  %v2726_v63 = vpop.f32.mrb[11].mxu1 }
 0xb4f   :  { %v948_v3 = vadd.f32 %v947_v62, %v864_v1  ;;  %v949_v6 = vadd.f32 %v947_v62, %v867_v2 }
 0xb51   :  { %vm950_vm13 = vcmp.gt.f32.partialorder %v948_v3, 0.0  ;;  %v952_v7 = vmul.f32 0.2, %v948_v3  ;;  %vm951_vm14 = vcmp.gt.f32.partialorder %v949_v6, 0.0  ;;  %v953_v9 = vmul.f32 0.2, %v949_v6 }
 0xb53   :  { %v954_v11 = vsel %vm950_vm13, %v948_v3, %v952_v7  ;;  %v955_v14 = vsel %vm951_vm14, %v949_v6, %v953_v9  ;;  %vm2247_vm14 = vcmask 123904  }
 0xb54   :  { %v956_v15 = vsel %vm3750_vm6, %v954_v11, -1e+30  ;;  %v957_v17 = vsel %vm3754_vm10, %v955_v14, -1e+30 }
 0xb55   :  { %v958_v19 = vsel %vm510_vm9, %v956_v15, -inf  ;;  %v961_v20 = vsel %vm510_vm9, %v957_v17, -inf }
 0xb56   :  { %959 = vmax.xlane.f32.xlu0 %v958_v19  ;;  %962 = vmax.xlane.f32.xlu1 %v961_v20 }
 0xbe3   :  { %v960_v22 = vpop.xlane.xlu0 %959  ;;  %v963_v23 = vpop.xlane.xlu1 %962 }
 0xbe4   :  { %v964_v26 = vsub.f32 %v956_v15, %v960_v22  ;;  %v965_v27 = vsub.f32 %v957_v17, %v963_v23 }
 0xbe6   :  { %v966_v29 = vmul.f32 1.442695, %v964_v26  ;;  %v968_v30 = vmul.f32 1.442695, %v965_v27 }
 0xbe8   :  { %2996 = vpow2.f32 %v966_v29 }
 0xbe9   :  { %2998 = vpow2.f32 %v968_v30 }
 0xbf2   :  { %v2997_v33 = vpop.eup %2996 }
 0xbf3   :  { %v2999_v36 = vpop.eup %2998  ;;  %v970_v37 = vsel %vm3750_vm6, %v2997_v33, 0.0 }
 0xbf4   :  { %v972_v38 = vsel %vm510_vm9, %v970_v37, 0.0  ;;  %v971_v39 = vsel %vm3754_vm10, %v2999_v36, 0.0 }
 0xbf5   :  { %973 = vadd.xlane.f32.xlu0 %v972_v38  ;;  %v975_v40 = vsel %vm510_vm9, %v971_v39, 0.0 }
 0xbf6   :  { %976 = vadd.xlane.f32.xlu1 %v975_v40 }
 0xc82   :  { %v974_v41 = vpop.xlane.xlu0 %973 }
 0xc83   :  { %v978_v43 = vmax.f32 %v974_v41, 1e-20  ;;  %v977_v44 = vpop.xlane.xlu1 %976 }
 0xc84   :  { %v979_v46 = vmax.f32 %v977_v44, 1e-20 }
 0xc85   :  { %3000 = vrcp.f32 %v978_v43 }
 0xc86   :  { %3002 = vrcp.f32 %v979_v46 }
 0xc8f   :  { %v3001_v48 = vpop.eup %3000 }
 0xc90   :  { %v3003_v50 = vpop.eup %3002  ;;  %v982_v52 = vmul.f32 %v3001_v48, %v970_v37 }
 0xc91   :  { %v983_v35 = vmul.f32 %v3003_v50, %v971_v39 }
 0xc93   :  { %v984_v53 = vpack.c.bf16 %v983_v35, %v982_v52 }
 0xc95   :  { %2730 = vmatmul.mubr.msk.bf16.vlgmr.msra.gmra.mrb[16].mxu1 %vm510_vm9, %v984_v53 }
 0xc96   :  { %2745 = vmatprep.mubr.msk.f32.mxu1 %vm3422_vm1, %v3421_v0 }
 0xd68   :  { %v1023_v54 = vpop.f32.mrb[16].mxu1 }
 0xd69   :  { %v1024_v55 = vadd.f32 %v3777_v16, %v1023_v54  ;;  %v2731_v56 = vpop.f32.mrb[17].mxu1 }
 0xd6a   :  { %v1026_v57 = vpop.f32.mrb[18].mxu1 }
 0xd6b   :  { %v1030_v58 = vsub.f32 %v1024_v55, %v3848_v51  ;;  %v1027_v59 = vadd.f32 %v3777_v16, %v1026_v57  ;;  %v2732_v60 = vpop.f32.mrb[19].mxu1 }
 0xd6d   :  { %v3894_v61 = vmul.f32 %v1030_v58, %v3783_v21  ;;  %v1031_v62 = vsub.f32 %v1027_v59, %v3851_v34 }
 0xd6f   :  { %v1034_v63 = vmul.f32 0.1, %v3894_v61  ;;  %v3899_v1 = vmul.f32 %v1031_v62, %v3783_v21 }
 0xd71   :  { %v1035_v2 = vmul.f32 0.1, %v3899_v1  ;;  %v3903_v3 = vadd.f32 %v1034_v63, %v3709_v10 }
 0xd73   :  { %v3906_v51 = vadd.f32 %v1035_v2, %v3707_v8 }
 0xd75   :  { %v1038_v6 = vpack.c.bf16 %v3906_v51, %v3903_v3 }
 0xd77   :  { %2738 = vmatmul.mubr.msk.bf16.vlgmr.msra.gmra.mrb[12].mxu0 %vm352_vm2, %v1038_v6 }
 0xd78   :  { %2750 = vmatprep.mubr.msk.bf16.mxu0 %vm3422_vm1, %v3421_v0 }
 0xe4a   :  { %v1076_v34 = vpop.f32.mrb[12].mxu0 }
 0xe4b   :  { %v1083_v7 = vmul.f32 %v3721_v13, %v1076_v34  ;;  %v2739_v9 = vpop.f32.mrb[13].mxu0 }
 0xe4c   :  { %v1079_v11 = vpop.f32.mrb[14].mxu0 }
 0xe4d   :  { %v1084_v14 = vmul.f32 %v3721_v13, %v1079_v11  ;;  %v2900_v15 = vpack.c.bf16 %v1079_v11, %v1076_v34  ;;  %v2740_v17 = vpop.f32.mrb[15].mxu0  ;;  %v1085_v19 = vsel %vm352_vm2, %v1083_v7, 0.0 }
 0xe4e   :  { %1086 = vadd.xlane.f32.xlu0 %v1085_v19 }
 0xe4f   :  { %2902 = vmatpush3.bf16.xpose.msk.msra.mxu1 %vm3726_vm3, %v2900_v15  ;;  %2749 = vmatpush3.bf16.msra.mxu0 %v2900_v15  ;;  %v1088_v20 = vsel %vm352_vm2, %v1084_v14, 0.0  ;;  %v1257_v14 = vadd.f32 %v3894_v61, %v3839_v45  ;;  %v1258_v15 = vadd.f32 %v3899_v1, %v3844_v49 }
 0xe50   :  { %1089 = vadd.xlane.f32.xlu1 %v1088_v20  ;;  %2754 = vmatprep.subr.bf16.mxu1 %v3421_v0 }
 0xe51   :  { %2903 = vmatprep.subr.bf16.mxu0 %v3423_v12  ;;  %v1259_v19 = vmul.f32 2.0, %v1257_v14 }
 0xe56   :  { %2746 = vmatmul.mubr.msk.f32.vlgmr.msra.gmra.mrb[20].mxu1 %vm352_vm2, %v3736_v24 }
 0xe57   :  { %2755 = vmatpush3.bf16.msra.mxu1 %v3695_v4  ;;  %2758 = vmatprep.mubr.msk.bf16.mxu1 %vm3422_vm1, %v3421_v0 }
 0xe58   :  { %2756 = vmatprep.subr.bf16.mxu1 %v3421_v0 }
 0xe5b   :  { %2757 = vmatpush3.bf16.msra.mxu1 %v3699_v5 }
 0xe5c   :  { %2775 = vmatprep.subr.bf16.mxu1 %v3421_v0 }
 0xedb   :  { %v1087_v27 = vpop.xlane.xlu0 %1086 }
 0xedd   :  { %v1090_v29 = vpop.xlane.xlu1 %1089 }
 0xf29   :  { %v1163_v22 = vpop.f32.mrb[20].mxu1 }
 0xf2a   :  { %v1170_v23 = vrot.slane %v1163_v22, %v3745_v31  ;;  %v2747_v26 = vpop.f32.mrb[21].mxu1 }
 0xf2b   :  { %v1260_v26 = vmul.f32 2.0, %v1258_v15 }
 0xf2c   :  { %v1171_v30 = vadd.f32 %v1170_v23, %v1087_v27  ;;  %v1172_v33 = vadd.f32 %v1170_v23, %v1090_v29 }
 0xf2d   :  { %v1262_v1 = vadd.f32 %v1260_v26, %v3793_v32 }
 0xf2e   :  { %vm1173_vm15 = vcmp.gt.f32.partialorder %v1171_v30, 0.0  ;;  %v1175_v36 = vmul.f32 0.2, %v1171_v30  ;;  %vm1174_vm0 = vcmp.gt.f32.partialorder %v1172_v33, 0.0  ;;  %v1176_v37 = vmul.f32 0.2, %v1172_v33 }
 0xf30   :  { %v1177_v38 = vsel %vm1173_vm15, %v1171_v30, %v1175_v36  ;;  %v1178_v39 = vsel %vm1174_vm0, %v1172_v33, %v1176_v37  ;;  %v1261_v36 = vadd.f32 %v1259_v19, %v3788_v28 }
 0xf31   :  { %v1179_v40 = vsel %vm3750_vm6, %v1177_v38, -1e+30  ;;  %v1180_v41 = vsel %vm3754_vm10, %v1178_v39, -1e+30 }
 0xf32   :  { %v1181_v43 = vsel %vm510_vm9, %v1179_v40, -inf  ;;  %v1184_v44 = vsel %vm510_vm9, %v1180_v41, -inf }
 0xf33   :  { %1182 = vmax.xlane.f32.xlu0 %v1181_v43  ;;  %1185 = vmax.xlane.f32.xlu1 %v1184_v44 }
 0xfc0   :  { %v1183_v46 = vpop.xlane.xlu0 %1182  ;;  %v1186_v48 = vpop.xlane.xlu1 %1185 }
 0xfc1   :  { %v1187_v50 = vsub.f32 %v1179_v40, %v1183_v46  ;;  %v1188_v52 = vsub.f32 %v1180_v41, %v1186_v48 }
 0xfc3   :  { %v1189_v35 = vmul.f32 1.442695, %v1187_v50  ;;  %v1191_v53 = vmul.f32 1.442695, %v1188_v52 }
 0xfc5   :  { %3004 = vpow2.f32 %v1189_v35 }
 0xfc6   :  { %3006 = vpow2.f32 %v1191_v53 }
 0xfcf   :  { %v3005_v54 = vpop.eup %3004 }
 0xfd0   :  { %v3007_v55 = vpop.eup %3006  ;;  %v1193_v56 = vsel %vm3750_vm6, %v3005_v54, 0.0 }
 0xfd1   :  { %v1195_v57 = vsel %vm510_vm9, %v1193_v56, 0.0  ;;  %v1194_v58 = vsel %vm3754_vm10, %v3007_v55, 0.0 }
 0xfd2   :  { %1196 = vadd.xlane.f32.xlu0 %v1195_v57  ;;  %v1198_v59 = vsel %vm510_vm9, %v1194_v58, 0.0 }
 0xfd3   :  { %1199 = vadd.xlane.f32.xlu1 %v1198_v59 }
0x105f   :  { %v1197_v60 = vpop.xlane.xlu0 %1196 }
0x1060   :  { %v1201_v62 = vmax.f32 %v1197_v60, 1e-20  ;;  %v1200_v63 = vpop.xlane.xlu1 %1199 }
0x1061   :  { %v1202_v2 = vmax.f32 %v1200_v63, 1e-20 }
0x1062   :  { %3008 = vrcp.f32 %v1201_v62 }
0x1063   :  { %3010 = vrcp.f32 %v1202_v2 }
0x106c   :  { %v3009_v6 = vpop.eup %3008 }
0x106d   :  { %v3011_v34 = vpop.eup %3010  ;;  %v1205_v7 = vmul.f32 %v3009_v6, %v1193_v56 }
0x106e   :  { %v1206_v9 = vmul.f32 %v3011_v34, %v1194_v58 }
0x1070   :  { %v1207_v11 = vpack.c.bf16 %v1206_v9, %v1205_v7 }
0x1072   :  { %2751 = vmatmul.mubr.msk.bf16.vlgmr.msra.gmra.mrb[16].mxu0 %vm510_vm9, %v1207_v11 }
0x1073   :  { %2766 = vmatprep.mubr.msk.f32.mxu0 %vm3422_vm1, %v3421_v0 }
0x1145   :  { %v1246_v17 = vpop.f32.mrb[16].mxu0 }
0x1146   :  { %v1247_v20 = vadd.f32 %v3777_v16, %v1246_v17  ;;  %v2752_v22 = vpop.f32.mrb[17].mxu0 }
0x1147   :  { %v1249_v23 = vpop.f32.mrb[18].mxu0 }
0x1148   :  { %v1253_v27 = vsub.f32 %v1247_v20, %v3903_v3  ;;  %v1250_v29 = vadd.f32 %v3777_v16, %v1249_v23  ;;  %v2753_v30 = vpop.f32.mrb[19].mxu0 }
0x114a   :  { %v1255_v33 = vmul.f32 %v1253_v27, %v3783_v21  ;;  %v1254_v45 = vsub.f32 %v1250_v29, %v3906_v51 }
0x114c   :  { %v1263_v61 = vadd.f32 %v1261_v36, %v1255_v33  ;;  %v1256_v49 = vmul.f32 %v1254_v45, %v3783_v21 }
0x114e   :  { %v1265_v37 = vmul.f32 0.016666668, %v1263_v61  ;;  %v1264_v38 = vadd.f32 %v1262_v1, %v1256_v49 }
0x1150   :  { %v1266_v39 = vmul.f32 0.016666668, %v1264_v38  ;;  %v3958_v40 = vadd.f32 %v1265_v37, %v3709_v10 }
0x1152   :  { %v3961_v3 = vadd.f32 %v1266_v39, %v3707_v8 }
0x1154   :  { %v1269_v41 = vpack.c.bf16 %v3961_v3, %v3958_v40 }
0x1156   :  { %2759 = vmatmul.mubr.msk.bf16.vlgmr.msra.gmra.mrb[24].mxu1 %vm352_vm2, %v1269_v41 }
0x1157   :  { %2776 = vmatpush3.bf16.msra.mxu1 %v3695_v4  ;;  %2779 = vmatprep.mubr.msk.bf16.mxu1 %vm3422_vm1, %v3421_v0 }
0x1158   :  { %2777 = vmatprep.subr.bf16.mxu1 %v3421_v0 }
0x115b   :  { %2778 = vmatpush3.bf16.msra.mxu1 %v3699_v5 }
0x115c   :  { %2790 = vmatprep.subr.bf16.mxu1 %v3421_v0 }
0x1229   :  { %v1307_v10 = vpop.f32.mrb[24].mxu1 }
0x122a   :  { %v1314_v8 = vmul.f32 %v3721_v13, %v1307_v10  ;;  %v2760_v28 = vpop.f32.mrb[25].mxu1 }
0x122b   :  { %v1310_v32 = vpop.f32.mrb[26].mxu1 }
0x122c   :  { %v1315_v51 = vmul.f32 %v3721_v13, %v1310_v32  ;;  %v2904_v43 = vpack.c.bf16 %v1310_v32, %v1307_v10  ;;  %v2761_v44 = vpop.f32.mrb[27].mxu1  ;;  %v1316_v46 = vsel %vm352_vm2, %v1314_v8, 0.0 }
0x122d   :  { %1317 = vadd.xlane.f32.xlu0 %v1316_v46 }
0x122e   :  { %2906 = vmatpush3.bf16.xpose.msk.msra.mxu0 %vm3726_vm3, %v2904_v43  ;;  %v1319_v48 = vsel %vm352_vm2, %v1315_v51, 0.0 }
0x122f   :  { %1320 = vadd.xlane.f32.xlu1 %v1319_v48  ;;  %2769 = vmatprep.subr.bf16.mxu0 %v3421_v0 }
0x1235   :  { %2767 = vmatmul.mubr.msk.f32.vlgmr.msra.gmra.mrb[20].mxu0 %vm352_vm2, %v3736_v24 }
0x1236   :  { %2770 = vmatpush3.bf16.msra.mxu0 %v2904_v43  ;;  %2771 = vmatprep.mubr.msk.bf16.mxu0 %vm3422_vm1, %v3421_v0 }
0x1237   :  { %2907 = vmatprep.subr.bf16.mxu0 %v3423_v12 }
0x12ba   :  { %v1318_v53 = vpop.xlane.xlu0 %1317 }
0x12bc   :  { %v1321_v54 = vpop.xlane.xlu1 %1320 }
0x1308   :  { %v1394_v50 = vpop.f32.mrb[20].mxu0 }
0x1309   :  { %v1401_v52 = vrot.slane %v1394_v50, %v3745_v31  ;;  %v2768_v35 = vpop.f32.mrb[21].mxu0 }
0x130b   :  { %v1402_v55 = vadd.f32 %v1401_v52, %v1318_v53  ;;  %v1403_v56 = vadd.f32 %v1401_v52, %v1321_v54 }
0x130d   :  { %vm1405_vm4 = vcmp.gt.f32.partialorder %v1403_v56, 0.0  ;;  %v1407_v57 = vmul.f32 0.2, %v1403_v56  ;;  %vm1404_vm5 = vcmp.gt.f32.partialorder %v1402_v55, 0.0  ;;  %v1406_v58 = vmul.f32 0.2, %v1402_v55 }
0x130f   :  { %v1409_v59 = vsel %vm1405_vm4, %v1403_v56, %v1407_v57  ;;  %v1408_v60 = vsel %vm1404_vm5, %v1402_v55, %v1406_v58 }
0x1310   :  { %v1411_v62 = vsel %vm3754_vm10, %v1409_v59, -1e+30  ;;  %v1410_v63 = vsel %vm3750_vm6, %v1408_v60, -1e+30 }
0x1311   :  { %v1415_v2 = vsel %vm510_vm9, %v1411_v62, -inf  ;;  %v1412_v6 = vsel %vm510_vm9, %v1410_v63, -inf }
0x1312   :  { %1416 = vmax.xlane.f32.xlu1 %v1415_v2  ;;  %1413 = vmax.xlane.f32.xlu0 %v1412_v6 }
0x139f   :  { %v1417_v34 = vpop.xlane.xlu1 %1416  ;;  %v1414_v7 = vpop.xlane.xlu0 %1413 }
0x13a0   :  { %v1419_v9 = vsub.f32 %v1411_v62, %v1417_v34  ;;  %v1418_v11 = vsub.f32 %v1410_v63, %v1414_v7 }
0x13a2   :  { %v1422_v14 = vmul.f32 1.442695, %v1419_v9  ;;  %v1420_v15 = vmul.f32 1.442695, %v1418_v11 }
0x13a4   :  { %3012 = vpow2.f32 %v1422_v14 }
0x13a5   :  { %3014 = vpow2.f32 %v1420_v15 }
0x13ae   :  { %v3013_v17 = vpop.eup %3012 }
0x13af   :  { %v3015_v19 = vpop.eup %3014  ;;  %v1425_v20 = vsel %vm3754_vm10, %v3013_v17, 0.0 }
0x13b0   :  { %v1429_v22 = vsel %vm510_vm9, %v1425_v20, 0.0  ;;  %v1424_v23 = vsel %vm3750_vm6, %v3015_v19, 0.0 }
0x13b1   :  { %1430 = vadd.xlane.f32.xlu1 %v1429_v22  ;;  %v1426_v26 = vsel %vm510_vm9, %v1424_v23, 0.0 }
0x13b2   :  { %1427 = vadd.xlane.f32.xlu0 %v1426_v26 }
0x143e   :  { %v1431_v27 = vpop.xlane.xlu1 %1430 }
0x143f   :  { %v1433_v29 = vmax.f32 %v1431_v27, 1e-20  ;;  %v1428_v30 = vpop.xlane.xlu0 %1427 }
0x1440   :  { %v1432_v33 = vmax.f32 %v1428_v30, 1e-20 }
0x1441   :  { %3016 = vrcp.f32 %v1433_v29 }
0x1442   :  { %3018 = vrcp.f32 %v1432_v33 }
0x144b   :  { %v3017_v36 = vpop.eup %3016 }
0x144c   :  { %v3019_v45 = vpop.eup %3018  ;;  %v1437_v61 = vmul.f32 %v3017_v36, %v1425_v20 }
0x144d   :  { %v1436_v49 = vmul.f32 %v3019_v45, %v1424_v23 }
0x144f   :  { %v1438_v1 = vpack.c.bf16 %v1437_v61, %v1436_v49 }
0x1451   :  { %2772 = vmatmul.mubr.msk.bf16.vlgmr.msra.gmra.mrb[24].mxu0 %vm510_vm9, %v1438_v1 }
0x1452   :  { %2787 = vmatprep.mubr.msk.f32.mxu0 %vm3422_vm1, %v3421_v0 }
0x1524   :  { %v1477_v37 = vpop.f32.mrb[24].mxu0 }
0x1525   :  { %v1478_v38 = vadd.f32 %v3777_v16, %v1477_v37  ;;  %v2773_v39 = vpop.f32.mrb[25].mxu0 }
0x1526   :  { %v1480_v41 = vpop.f32.mrb[26].mxu0 }
0x1527   :  { %v1484_v10 = vsub.f32 %v1478_v38, %v3958_v40  ;;  %v1481_v8 = vadd.f32 %v3777_v16, %v1480_v41  ;;  %v2774_v28 = vpop.f32.mrb[27].mxu0 }
0x1529   :  { %v4004_v32 = vmul.f32 %v1484_v10, %v3783_v21  ;;  %v1485_v51 = vsub.f32 %v1481_v8, %v3961_v3 }
0x152b   :  { %v1488_v43 = vmul.f32 0.05, %v4004_v32  ;;  %v4009_v44 = vmul.f32 %v1485_v51, %v3783_v21 }
0x152d   :  { %v1489_v46 = vmul.f32 0.05, %v4009_v44  ;;  %v4013_v48 = vadd.f32 %v1488_v43, %v3958_v40 }
0x152f   :  { %v4016_v50 = vadd.f32 %v1489_v46, %v3961_v3 }
0x1531   :  { %v1492_v52 = vpack.c.bf16 %v4016_v50, %v4013_v48 }
0x1533   :  { %2780 = vmatmul.mubr.msk.bf16.vlgmr.msra.gmra.mrb[28].mxu1 %vm352_vm2, %v1492_v52 }
0x1534   :  { %2792 = vmatprep.mubr.msk.bf16.mxu1 %vm3422_vm1, %v3421_v0 }
0x1606   :  { %v1530_v35 = vpop.f32.mrb[28].mxu1 }
0x1607   :  { %v1537_v53 = vmul.f32 %v3721_v13, %v1530_v35  ;;  %v2781_v54 = vpop.f32.mrb[29].mxu1 }
0x1608   :  { %v1533_v55 = vpop.f32.mrb[30].mxu1 }
0x1609   :  { %v1538_v56 = vmul.f32 %v3721_v13, %v1533_v55  ;;  %v2908_v57 = vpack.c.bf16 %v1533_v55, %v1530_v35  ;;  %v2782_v58 = vpop.f32.mrb[31].mxu1  ;;  %v1539_v59 = vsel %vm352_vm2, %v1537_v53, 0.0 }
0x160a   :  { %1540 = vadd.xlane.f32.xlu0 %v1539_v59 }
0x160b   :  { %2910 = vmatpush3.bf16.xpose.msk.msra.mxu0 %vm3726_vm3, %v2908_v57  ;;  %2791 = vmatpush3.bf16.msra.mxu1 %v2908_v57  ;;  %v1542_v60 = vsel %vm352_vm2, %v1538_v56, 0.0 }
0x160c   :  { %1543 = vadd.xlane.f32.xlu1 %v1542_v60  ;;  %2796 = vmatprep.subr.bf16.mxu0 %v3421_v0 }
0x160d   :  { %2911 = vmatprep.subr.bf16.mxu1 %v3423_v12 }
0x1612   :  { %2788 = vmatmul.mubr.msk.f32.vlgmr.msra.gmra.mrb[22].mxu0 %vm352_vm2, %v3736_v24 }
0x1613   :  { %2797 = vmatpush3.bf16.msra.mxu0 %v3695_v4  ;;  %2800 = vmatprep.mubr.msk.bf16.mxu0 %vm3422_vm1, %v3421_v0 }
0x1614   :  { %2798 = vmatprep.subr.bf16.mxu0 %v3421_v0 }
0x1617   :  { %2799 = vmatpush3.bf16.msra.mxu0 %v3699_v5 }
0x1618   :  { %2817 = vmatprep.subr.bf16.mxu0 %v3421_v0 }
0x1697   :  { %v1541_v2 = vpop.xlane.xlu0 %1540 }
0x1699   :  { %v1544_v6 = vpop.xlane.xlu1 %1543 }
0x16e5   :  { %v1617_v13 = vpop.f32.mrb[22].mxu0 }
0x16e6   :  { %v1624_v62 = vrot.slane %v1617_v13, %v3745_v31  ;;  %v2789_v63 = vpop.f32.mrb[23].mxu0  ;;  %v3050_v13 = vld [vmem:[#allocation14] sm:$0xff]  }
0x16e7   :  { %v4080_v63 = vld [vmem:[#allocation17] ss:$0 sm:$0xff] }
0x16e8   :  { %v1625_v34 = vadd.f32 %v1624_v62, %v1541_v2  ;;  %v1626_v7 = vadd.f32 %v1624_v62, %v1544_v6 }
0x16ea   :  { %vm1628_vm7 = vcmp.gt.f32.partialorder %v1626_v7, 0.0  ;;  %v1630_v24 = vmul.f32 0.2, %v1626_v7  ;;  %vm1627_vm8 = vcmp.gt.f32.partialorder %v1625_v34, 0.0  ;;  %v1629_v4 = vmul.f32 0.2, %v1625_v34 }
0x16ec   :  { %v1632_v9 = vsel %vm1628_vm7, %v1626_v7, %v1630_v24  ;;  %v1631_v11 = vsel %vm1627_vm8, %v1625_v34, %v1629_v4  ;;  %vm2296_vm7 = vcmask 1040384  }
0x16ed   :  { %v1634_v14 = vsel %vm3754_vm10, %v1632_v9, -1e+30  ;;  %v1633_v5 = vsel %vm3750_vm6, %v1631_v11, -1e+30 }
0x16ee   :  { %v1638_v15 = vsel %vm510_vm9, %v1634_v14, -inf  ;;  %v1635_v17 = vsel %vm510_vm9, %v1633_v5, -inf }
0x16ef   :  { %1639 = vmax.xlane.f32.xlu1 %v1638_v15  ;;  %1636 = vmax.xlane.f32.xlu0 %v1635_v17 }
0x177c   :  { %v1640_v19 = vpop.xlane.xlu1 %1639  ;;  %v1637_v20 = vpop.xlane.xlu0 %1636 }
0x177d   :  { %v1642_v22 = vsub.f32 %v1634_v14, %v1640_v19  ;;  %v1641_v23 = vsub.f32 %v1633_v5, %v1637_v20  ;;  %v4089_v14 = vld [vmem:[#allocation15] sm:$0x1] }
0x177f   :  { %v1645_v26 = vmul.f32 1.442695, %v1642_v22  ;;  %v1643_v27 = vmul.f32 1.442695, %v1641_v23 }
0x1781   :  { %3020 = vpow2.f32 %v1645_v26 }
0x1782   :  { %3022 = vpow2.f32 %v1643_v27 }
0x178b   :  { %v3021_v29 = vpop.eup %3020 }
0x178c   :  { %v3023_v30 = vpop.eup %3022  ;;  %v1648_v33 = vsel %vm3754_vm10, %v3021_v29, 0.0 }
0x178d   :  { %v1652_v36 = vsel %vm510_vm9, %v1648_v33, 0.0  ;;  %v1647_v45 = vsel %vm3750_vm6, %v3023_v30, 0.0 }
0x178e   :  { %1653 = vadd.xlane.f32.xlu1 %v1652_v36  ;;  %v1649_v61 = vsel %vm510_vm9, %v1647_v45, 0.0 }
0x178f   :  { %1650 = vadd.xlane.f32.xlu0 %v1649_v61 }
0x181b   :  { %v1654_v49 = vpop.xlane.xlu1 %1653 }
0x181c   :  { %v1656_v1 = vmax.f32 %v1654_v49, 1e-20  ;;  %v1651_v37 = vpop.xlane.xlu0 %1650 }
0x181d   :  { %v1655_v38 = vmax.f32 %v1651_v37, 1e-20 }
0x181e   :  { %3024 = vrcp.f32 %v1656_v1 }
0x181f   :  { %3026 = vrcp.f32 %v1655_v38 }
0x1828   :  { %v3025_v39 = vpop.eup %3024 }
0x1829   :  { %v3027_v41 = vpop.eup %3026  ;;  %v1660_v10 = vmul.f32 %v3025_v39, %v1648_v33 }
0x182a   :  { %v1659_v8 = vmul.f32 %v3027_v41, %v1647_v45 }
0x182c   :  { %v1661_v28 = vpack.c.bf16 %v1660_v10, %v1659_v8 }
0x182e   :  { %2793 = vmatmul.mubr.msk.bf16.vlgmr.msra.gmra.mrb[32].mxu1 %vm510_vm9, %v1661_v28 }
0x182f   :  { %2808 = vmatprep.mubr.msk.f32.mxu1 %vm3422_vm1, %v3421_v0 }
0x1901   :  { %v1700_v51 = vpop.f32.mrb[32].mxu1 }
0x1902   :  { %v1701_v43 = vadd.f32 %v3777_v16, %v1700_v51  ;;  %v2794_v46 = vpop.f32.mrb[33].mxu1 }
0x1903   :  { %v1703_v52 = vpop.f32.mrb[34].mxu1 }
0x1904   :  { %v1707_v35 = vsub.f32 %v1701_v43, %v4013_v48  ;;  %v1704_v53 = vadd.f32 %v3777_v16, %v1703_v52  ;;  %v2795_v54 = vpop.f32.mrb[35].mxu1 }
0x1906   :  { %v4059_v55 = vmul.f32 %v1707_v35, %v3783_v21  ;;  %v1708_v56 = vsub.f32 %v1704_v53, %v4016_v50  ;;  %v3051_v50 = vld [vmem:[#allocation14 + $0x8] sm:$0xff]  }
0x1908   :  { %v1711_v57 = vmul.f32 0.05, %v4059_v55  ;;  %v4064_v58 = vmul.f32 %v1708_v56, %v3783_v21 }
0x190a   :  { %v1712_v59 = vmul.f32 0.05, %v4064_v58  ;;  %v4068_v60 = vadd.f32 %v1711_v57, %v3958_v40 }
0x190c   :  { %v4071_v48 = vadd.f32 %v1712_v59, %v3961_v3 }
0x190e   :  { %v1715_v16 = vpack.c.bf16 %v4071_v48, %v4068_v60 }
0x1910   :  { %2801 = vmatmul.mubr.msk.bf16.vlgmr.msra.gmra.mrb[28].mxu0 %vm352_vm2, %v1715_v16 }
0x1911   :  { %2818 = vmatpush3.bf16.msra.mxu0 %v3050_v13  ;;  %2821 = vmatprep.mubr.msk.bf16.mxu0 %vm3422_vm1, %v3421_v0 }
0x1912   :  { %2819 = vmatprep.subr.bf16.mxu0 %v3421_v0 }
0x1915   :  { %2820 = vmatpush3.bf16.msra.mxu0 %v3051_v50 }
0x1916   :  { %2832 = vmatprep.subr.bf16.mxu0 %v3421_v0 }
0x19e3   :  { %v1753_v62 = vpop.f32.mrb[28].mxu0 }
0x19e4   :  { %v1760_v2 = vmul.f32 %v4080_v63, %v1753_v62  ;;  %v2802_v6 = vpop.f32.mrb[29].mxu0 }
0x19e5   :  { %v1756_v34 = vpop.f32.mrb[30].mxu0 }
0x19e6   :  { %v1761_v7 = vmul.f32 %v4080_v63, %v1756_v34  ;;  %v2912_v24 = vpack.c.bf16 %v1756_v34, %v1753_v62  ;;  %v2803_v4 = vpop.f32.mrb[31].mxu0  ;;  %v1762_v9 = vsel %vm352_vm2, %v1760_v2, 0.0  ;;  %v4112_v62 = vld [vmem:[#allocation18] ss:$0 sm:$0xff] }
0x19e7   :  { %1763 = vadd.xlane.f32.xlu0 %v1762_v9 }
0x19e8   :  { %2914 = vmatpush3.bf16.xpose.msk.msra.mxu1 %vm3726_vm3, %v2912_v24  ;;  %v1765_v11 = vsel %vm352_vm2, %v1761_v7, 0.0 }
0x19e9   :  { %1766 = vadd.xlane.f32.xlu1 %v1765_v11  ;;  %2811 = vmatprep.subr.bf16.mxu1 %v3421_v0 }
0x19ef   :  { %2809 = vmatmul.mubr.msk.f32.vlgmr.msra.gmra.mrb[22].mxu1 %vm352_vm2, %v4089_v14 }
0x19f0   :  { %2812 = vmatpush3.bf16.msra.mxu1 %v2912_v24  ;;  %2813 = vmatprep.mubr.msk.bf16.mxu1 %vm3422_vm1, %v3421_v0 }
0x19f1   :  { %2915 = vmatprep.subr.bf16.mxu1 %v3423_v12 }
0x1a74   :  { %v1764_v19 = vpop.xlane.xlu0 %1763 }
0x1a76   :  { %v1767_v20 = vpop.xlane.xlu1 %1766 }
0x1ac2   :  { %v1840_v5 = vpop.f32.mrb[22].mxu1 }
0x1ac3   :  { %v1847_v15 = vrot.slane %v1840_v5, %v3745_v31  ;;  %v2810_v17 = vpop.f32.mrb[23].mxu1 }
0x1ac5   :  { %v1848_v22 = vadd.f32 %v1847_v15, %v1764_v19  ;;  %v1849_v23 = vadd.f32 %v1847_v15, %v1767_v20 }
0x1ac7   :  { %vm1850_vm11 = vcmp.gt.f32.partialorder %v1848_v22, 0.0  ;;  %v1852_v26 = vmul.f32 0.2, %v1848_v22  ;;  %vm1851_vm12 = vcmp.gt.f32.partialorder %v1849_v23, 0.0  ;;  %v1853_v27 = vmul.f32 0.2, %v1849_v23 }
0x1ac9   :  { %v1854_v29 = vsel %vm1850_vm11, %v1848_v22, %v1852_v26  ;;  %v1855_v30 = vsel %vm1851_vm12, %v1849_v23, %v1853_v27  ;;  %vm2422_vm12 = vcmask 392192  }
0x1aca   :  { %v1856_v33 = vsel %vm3750_vm6, %v1854_v29, -1e+30  ;;  %v1857_v36 = vsel %vm3754_vm10, %v1855_v30, -1e+30 }
0x1acb   :  { %v1858_v45 = vsel %vm510_vm9, %v1856_v33, -inf  ;;  %v1861_v61 = vsel %vm510_vm9, %v1857_v36, -inf }
0x1acc   :  { %1859 = vmax.xlane.f32.xlu0 %v1858_v45  ;;  %1862 = vmax.xlane.f32.xlu1 %v1861_v61 }
0x1b59   :  { %v1860_v49 = vpop.xlane.xlu0 %1859  ;;  %v1863_v1 = vpop.xlane.xlu1 %1862 }
0x1b5a   :  { %v1864_v37 = vsub.f32 %v1856_v33, %v1860_v49  ;;  %v1865_v38 = vsub.f32 %v1857_v36, %v1863_v1 }
0x1b5c   :  { %v1866_v39 = vmul.f32 1.442695, %v1864_v37  ;;  %v1868_v41 = vmul.f32 1.442695, %v1865_v38 }
0x1b5e   :  { %3028 = vpow2.f32 %v1866_v39 }
0x1b5f   :  { %3030 = vpow2.f32 %v1868_v41 }
0x1b68   :  { %v3029_v10 = vpop.eup %3028 }
0x1b69   :  { %v3031_v8 = vpop.eup %3030  ;;  %v1870_v28 = vsel %vm3750_vm6, %v3029_v10, 0.0 }
0x1b6a   :  { %v1872_v51 = vsel %vm510_vm9, %v1870_v28, 0.0  ;;  %v1871_v43 = vsel %vm3754_vm10, %v3031_v8, 0.0 }
0x1b6b   :  { %1873 = vadd.xlane.f32.xlu0 %v1872_v51  ;;  %v1875_v46 = vsel %vm510_vm9, %v1871_v43, 0.0 }
0x1b6c   :  { %1876 = vadd.xlane.f32.xlu1 %v1875_v46 }
0x1bf8   :  { %v1874_v52 = vpop.xlane.xlu0 %1873 }
0x1bf9   :  { %v1878_v35 = vmax.f32 %v1874_v52, 1e-20  ;;  %v1877_v53 = vpop.xlane.xlu1 %1876 }
0x1bfa   :  { %v1879_v54 = vmax.f32 %v1877_v53, 1e-20 }
0x1bfb   :  { %3032 = vrcp.f32 %v1878_v35 }
0x1bfc   :  { %3034 = vrcp.f32 %v1879_v54 }
0x1c05   :  { %v3033_v56 = vpop.eup %3032 }
0x1c06   :  { %v3035_v57 = vpop.eup %3034  ;;  %v1882_v59 = vmul.f32 %v3033_v56, %v1870_v28 }
0x1c07   :  { %v1883_v16 = vmul.f32 %v3035_v57, %v1871_v43 }
0x1c09   :  { %v1884_v13 = vpack.c.bf16 %v1883_v16, %v1882_v59 }
0x1c0b   :  { %2814 = vmatmul.mubr.msk.bf16.vlgmr.msra.gmra.mrb[36].mxu1 %vm510_vm9, %v1884_v13 }
0x1c0c   :  { %2829 = vmatprep.mubr.msk.f32.mxu1 %vm3422_vm1, %v3421_v0 }
0x1cde   :  { %v1923_v50 = vpop.f32.mrb[36].mxu1 }
0x1cdf   :  { %v1924_v2 = vadd.f32 %v4112_v62, %v1923_v50  ;;  %v2815_v6 = vpop.f32.mrb[37].mxu1  ;;  %v4162_v50 = vld [vmem:[#allocation8] sm:$0x3] }
0x1ce0   :  { %v1926_v34 = vpop.f32.mrb[38].mxu1  ;;  %v2248_v6 = vsel %vm2247_vm14, %v4162_v50, 0.0 }
0x1ce1   :  { %v1930_v7 = vsub.f32 %v1924_v2, %v4068_v60  ;;  %v1927_v24 = vadd.f32 %v4112_v62, %v1926_v34  ;;  %v2816_v4 = vpop.f32.mrb[39].mxu1  ;;  %v2172_v2 = vld [vmem:[#allocation9] sm:$0xff]  ;;  %v2173_v34 = vld [vmem:[#allocation9 + $0x8] sm:$0xff] }
0x1ce2   :  { %vm2254_vm15 = vcmp.gt.f32.partialorder %v2172_v2, 0.0 }
0x1ce3   :  { %v4118_v9 = vmul.f32 %v1930_v7, %v3783_v21  ;;  %v1931_v11 = vsub.f32 %v1927_v24, %v4071_v48  ;;  %v2256_v42 = vsel %vm2254_vm15, 1, %v3424_v25  ;;  %v3425_v7 = vmov 1  }
0x1ce5   :  { %v1934_v5 = vmul.f32 0.1, %v4118_v9  ;;  %v4123_v15 = vmul.f32 %v1931_v11, %v3783_v21 }
0x1ce7   :  { %v1935_v17 = vmul.f32 0.1, %v4123_v15  ;;  %v4127_v19 = vadd.f32 %v1934_v5, %v3958_v40 }
0x1ce9   :  { %v4130_v60 = vadd.f32 %v1935_v17, %v3961_v3 }
0x1ceb   :  { %v1938_v20 = vpack.c.bf16 %v4130_v60, %v4127_v19 }
0x1ced   :  { %2822 = vmatmul.mubr.msk.bf16.vlgmr.msra.gmra.mrb[32].mxu0 %vm352_vm2, %v1938_v20 }
0x1cee   :  { %2834 = vmatprep.mubr.msk.bf16.mxu0 %vm3422_vm1, %v3421_v0 }
0x1dc0   :  { %v1976_v48 = vpop.f32.mrb[32].mxu0 }
0x1dc1   :  { %v1983_v22 = vmul.f32 %v4080_v63, %v1976_v48  ;;  %v2823_v23 = vpop.f32.mrb[33].mxu0 }
0x1dc2   :  { %v1979_v26 = vpop.f32.mrb[34].mxu0 }
0x1dc3   :  { %v1984_v27 = vmul.f32 %v4080_v63, %v1979_v26  ;;  %v2916_v29 = vpack.c.bf16 %v1979_v26, %v1976_v48  ;;  %v2824_v30 = vpop.f32.mrb[35].mxu0  ;;  %v1985_v33 = vsel %vm352_vm2, %v1983_v22, 0.0  ;;  %v2158_v26 = vadd.f32 %v4123_v15, %v4064_v58 }
0x1dc4   :  { %1986 = vadd.xlane.f32.xlu0 %v1985_v33 }
0x1dc5   :  { %2918 = vmatpush3.bf16.xpose.msk.msra.mxu1 %vm3726_vm3, %v2916_v29  ;;  %2833 = vmatpush3.bf16.msra.mxu0 %v2916_v29  ;;  %v1988_v36 = vsel %vm352_vm2, %v1984_v27, 0.0 }
0x1dc6   :  { %1989 = vadd.xlane.f32.xlu1 %v1988_v36  ;;  %2919 = vmatprep.subr.bf16.mxu1 %v3423_v12 }
0x1dc7   :  { %2922 = vmatprep.subr.bf16.mxu0 %v3423_v12 }
0x1dcc   :  { %2830 = vmatmul.mubr.msk.f32.vlgmr.msra.gmra.mrb[40].mxu1 %vm352_vm2, %v4089_v14 }
0x1dcd   :  { %2842 = vmatprep.mubr.msk.f32.mxu1 %vm3422_vm1, %v3421_v0 }
0x1e51   :  { %v1987_v18 = vpop.xlane.xlu0 %1986 }
0x1e53   :  { %v1990_v49 = vpop.xlane.xlu1 %1989 }
0x1e9f   :  { %v2063_v63 = vpop.f32.mrb[40].mxu1 }
0x1ea0   :  { %v2070_v45 = vrot.slane %v2063_v63, %v3745_v31  ;;  %v2831_v61 = vpop.f32.mrb[41].mxu1  ;;  %v2160_v63 = vmul.f32 2.0, %v2158_v26  ;;  %v2320_v26 = vld [vmem:[#allocation20 + $0x38] sm:$0xff] }
0x1ea2   :  { %v2071_v1 = vadd.f32 %v2070_v45, %v1987_v18  ;;  %v2072_v37 = vadd.f32 %v2070_v45, %v1990_v49  ;;  %v2162_v15 = vadd.f32 %v2160_v63, %v4009_v44  ;;  %v2324_v63 = vld [vmem:[#allocation20 + $0x58] sm:$0xff] }
0x1ea4   :  { %vm2073_vm3 = vcmp.gt.f32.partialorder %v2071_v1, 0.0  ;;  %v2075_v38 = vmul.f32 0.2, %v2071_v1  ;;  %vm2074_vm13 = vcmp.gt.f32.partialorder %v2072_v37, 0.0  ;;  %v2076_v39 = vmul.f32 0.2, %v2072_v37 }
0x1ea6   :  { %v2077_v41 = vsel %vm2073_vm3, %v2071_v1, %v2075_v38  ;;  %v2078_v10 = vsel %vm2074_vm13, %v2072_v37, %v2076_v39  ;;  %vm2499_vm3 = vcmask 25600  }
0x1ea7   :  { %v2079_v14 = vsel %vm3750_vm6, %v2077_v41, -1e+30  ;;  %v2080_v8 = vsel %vm3754_vm10, %v2078_v10, -1e+30 }
0x1ea8   :  { %v2081_v28 = vsel %vm510_vm9, %v2079_v14, -inf  ;;  %v2084_v31 = vsel %vm510_vm9, %v2080_v8, -inf }
0x1ea9   :  { %2082 = vmax.xlane.f32.xlu0 %v2081_v28  ;;  %2085 = vmax.xlane.f32.xlu1 %v2084_v31 }
0x1f36   :  { %v2083_v51 = vpop.xlane.xlu0 %2082  ;;  %v2086_v43 = vpop.xlane.xlu1 %2085 }
0x1f37   :  { %v2087_v46 = vsub.f32 %v2079_v14, %v2083_v51  ;;  %v2088_v52 = vsub.f32 %v2080_v8, %v2086_v43 }
0x1f39   :  { %v2089_v35 = vmul.f32 1.442695, %v2087_v46  ;;  %v2091_v53 = vmul.f32 1.442695, %v2088_v52 }
0x1f3b   :  { %3036 = vpow2.f32 %v2089_v35 }
0x1f3c   :  { %3038 = vpow2.f32 %v2091_v53 }
0x1f45   :  { %v3037_v54 = vpop.eup %3036 }
0x1f46   :  { %v3039_v56 = vpop.eup %3038  ;;  %v2093_v57 = vsel %vm3750_vm6, %v3037_v54, 0.0  ;;  %vm2255_vm6 = vcmp.gt.f32.partialorder %v2173_v34, 0.0 }
0x1f47   :  { %v2095_v59 = vsel %vm510_vm9, %v2093_v57, 0.0  ;;  %v2094_v16 = vsel %vm3754_vm10, %v3039_v56, 0.0  ;;  %v2257_v47 = vsel %vm2255_vm6, 1, %v3424_v25  ;;  %v2157_v25 = vadd.f32 %v4118_v9, %v4059_v55 }
0x1f48   :  { %2096 = vadd.xlane.f32.xlu0 %v2095_v59  ;;  %v2098_v13 = vsel %vm510_vm9, %v2094_v16, 0.0 }
0x1f49   :  { %2099 = vadd.xlane.f32.xlu1 %v2098_v13  ;;  %v2159_v29 = vmul.f32 2.0, %v2157_v25  ;;  %v2319_v25 = vld [vmem:[#allocation20 + $0x30] sm:$0xff] }
0x1f4b   :  { %v2161_v1 = vadd.f32 %v2159_v29, %v4004_v32  ;;  %v2321_v29 = vld [vmem:[#allocation20 + $0x40] sm:$0xff] }
0x1f4c   :  { %2249 = vadd.xlane.f32.xlu0 %v2248_v6 }
0x1f5a   :  { %2259 = vperm.xlu1 %2974, %v2256_v42  }
0x1f5e   :  { %2976 = vset.pattern.permute.xlu1 %v3425_v7 }
0x1f5f   :  { %2278 = vperm.xlu1 %2976, %v2256_v42  }
0x1f62   :  { %2262 = vperm.xlu0 %2975, %v2257_v47  }
0x1f63   :  { %2281 = vperm.xlu1 %2976, %v2257_v47  }
0x1f66   :  { %2977 = vset.pattern.permute.xlu0 %v3425_v7 }
0x1fd5   :  { %v2097_v24 = vpop.xlane.xlu0 %2096 }
0x1fd6   :  { %v2101_v4 = vmax.f32 %v2097_v24, 1e-20  ;;  %v2100_v11 = vpop.xlane.xlu1 %2099 }
0x1fd7   :  { %v2102_v5 = vmax.f32 %v2100_v11, 1e-20  ;;  %v2314_v11 = vld [vmem:[#allocation20 + $0x8] sm:$0xff] }
0x1fd8   :  { %3040 = vrcp.f32 %v2101_v4 }
0x1fd9   :  { %3042 = vrcp.f32 %v2102_v5  ;;  %v4184_v10 = vpop.xlane.xlu0 %2249  ;;  %v2315_v5 = vld [vmem:[#allocation20 + $0x10] sm:$0xff] }
0x1fda   :  { %v2260_v37 = vpop.permute.xlu1 %2259  ;;  %vm2298_vm8 = vcmp.gt.f32.partialorder %v4184_v10, 0.0 }
0x1fdb   :  { %vm2264_vm10 = vcmp.eq.s32.totalorder %v2260_v37, 1 }
0x1fde   :  { %v2279_v14 = vpop.permute.xlu1 %2278 }
0x1fdf   :  { %vm2283_vm0 = vcmp.eq.s32.totalorder %v2279_v14, 1  ;;  %v2413_v14 = vld [vmem:[#allocation23 + $0x20] sm:$0xff] }
0x1fe1   :  { %v2263_v32 = vpop.permute.xlu0 %2262 }
0x1fe2   :  { %v3041_v17 = vpop.eup %3040  ;;  %vm2265_vm4 = vcmp.eq.s32.totalorder %v2263_v32, 1  ;;  %v2414_v32 = vld [vmem:[#allocation23 + $0x28] sm:$0xff] }
0x1fe3   :  { %v3043_v20 = vpop.eup %3042  ;;  %v2105_v48 = vmul.f32 %v3041_v17, %v2093_v57 }
0x1fe4   :  { %v2106_v22 = vmul.f32 %v3043_v20, %v2094_v16 }
0x1fe6   :  { %v2107_v23 = vpack.c.bf16 %v2106_v22, %v2105_v48  ;;  %v2317_v48 = vld [vmem:[#allocation20 + $0x20] sm:$0xff]  ;;  %v2318_v22 = vld [vmem:[#allocation20 + $0x28] sm:$0xff] }
0x1fe8   :  { %2835 = vmatmul.mubr.msk.bf16.vlgmr.msra.gmra.mrb[36].mxu0 %vm510_vm9, %v2107_v23  ;;  %v2929_v23 = vpack.c.bf16 %v2318_v22, %v2317_v48 }
0x1fe9   :  { %2869 = vmatprep.mubr.msk.f32.mxu0 %vm3422_vm1, %v3421_v0 }
0x20bb   :  { %v2146_v27 = vpop.f32.mrb[36].mxu0 }
0x20bc   :  { %v2147_v30 = vadd.f32 %v4112_v62, %v2146_v27  ;;  %v2836_v33 = vpop.f32.mrb[37].mxu0  ;;  %v2932_v27 = vpack.c.bf16 %v2320_v26, %v2319_v25 }
0x20bd   :  { %v2149_v36 = vpop.f32.mrb[38].mxu0 }
0x20be   :  { %v2153_v45 = vsub.f32 %v2147_v30, %v4127_v19  ;;  %v2150_v61 = vadd.f32 %v4112_v62, %v2149_v36  ;;  %v2837_v18 = vpop.f32.mrb[39].mxu0  ;;  %v2322_v30 = vld [vmem:[#allocation20 + $0x48] sm:$0xff]  ;;  %v2323_v36 = vld [vmem:[#allocation20 + $0x50] sm:$0xff] }
0x20bf   :  { %v2935_v33 = vpack.c.bf16 %v2322_v30, %v2321_v29  ;;  %v2409_v18 = vld [vmem:[#allocation23] sm:$0xff] }
0x20c0   :  { %v2155_v49 = vmul.f32 %v2153_v45, %v3783_v21  ;;  %v2154_v55 = vsub.f32 %v2150_v61, %v4130_v60  ;;  %v2282_v60 = vpop.permute.xlu1 %2281  ;;  %v2938_v45 = vpack.c.bf16 %v2324_v63, %v2323_v36  ;;  %v2251_v61 = vmax.f32 %v4184_v10, 1.0 }
0x20c1   :  { %vm2284_vm5 = vcmp.eq.s32.totalorder %v2282_v60, 1  ;;  %v2947_v60 = vpack.c.bf16 %v2414_v32, %v2413_v14 }
0x20c2   :  { %v2163_v9 = vadd.f32 %v2161_v1, %v2155_v49  ;;  %v2156_v58 = vmul.f32 %v2154_v55, %v3783_v21  ;;  %v2410_v49 = vld [vmem:[#allocation23 + $0x8] sm:$0xff]  ;;  %v2411_v1 = vld [vmem:[#allocation23 + $0x10] sm:$0xff] }
0x20c3   :  { %v2941_v55 = vpack.c.bf16 %v2410_v49, %v2409_v18 }
0x20c4   :  { %v2165_v38 = vmul.f32 0.016666668, %v2163_v9  ;;  %v2164_v39 = vadd.f32 %v2162_v15, %v2156_v58  ;;  %v2412_v9 = vld [vmem:[#allocation23 + $0x18] sm:$0xff] }
0x20c5   :  { %v2944_v58 = vpack.c.bf16 %v2412_v9, %v2411_v1 }
0x20c6   :  { %v2167_v41 = vadd.f32 %v2165_v38, %v3958_v40  ;;  %v2166_v19 = vmul.f32 0.016666668, %v2164_v39 }
0x20c8   :  { %3044 = vtanh.f32 %v2167_v41  ;;  %v2168_v62 = vadd.f32 %v2166_v19, %v3961_v3 }
0x20ca   :  { %3046 = vtanh.f32 %v2168_v62 }
0x20cb   :  { %3048 = vrcp.f32 %v2251_v61 }
0x20d2   :  { %v3045_v21 = vpop.eup %3044 }
0x20d3   :  { %v2266_v44 = vsel %vm2264_vm10, %v3045_v21, -1e+30  ;;  %v2285_v8 = vsel %vm2283_vm0, %v3045_v21, -1e+30 }
0x20d4   :  { %v3047_v28 = vpop.eup %3046  ;;  %v2268_v43 = vsel %vm352_vm2, %v2266_v44, -inf  ;;  %v2287_v3 = vsel %vm352_vm2, %v2285_v8, -inf }
0x20d5   :  { %v2267_v31 = vsel %vm2265_vm4, %v3047_v28, -1e+30  ;;  %v2286_v40 = vsel %vm2284_vm5, %v3047_v28, -1e+30  ;;  %v2920_v51 = vpack.c.bf16 %v3047_v28, %v3045_v21  ;;  %v3049_v15 = vpop.eup %3048  ;;  %v2571_v21 = vld [vmem:[#allocation21] ss:$0 sm:$0xff] }
0x20d6   :  { %v2269_v46 = vsel %vm352_vm2, %v2267_v31, -inf  ;;  %v2288_v52 = vsel %vm352_vm2, %v2286_v40, -inf  ;;  %v2573_v40 = vld [vmem:[#allocation24] ss:$0 sm:$0xff] }
0x20d7   :  { %v2270_v35 = vmax.f32 %v2268_v43, %v2269_v46  ;;  %v2289_v53 = vmax.f32 %v2287_v3, %v2288_v52  ;;  %2921 = vmatpush3.bf16.msra.mxu1 %v2920_v51 }
0x20d8   :  { %2940 = vmatprep.subr.bf16.mxu1 %v3423_v12 }
0x20d9   :  { %v2271_v54 = vrot.slane %v2270_v35, 4  ;;  %v2290_v56 = vrot.slane %v2289_v53, 4 }
0x20da   :  { %2843 = vmatmul.mubr.msk.f32.vlgmr.msra.gmra.mrb[42].mxu1 %vm510_vm9, %v4162_v50  ;;  %v2313_v50 = vld [vmem:[#allocation20] sm:$0xff]  ;;  %vm2332_vm9 = vcmask 785408  }
0x20db   :  { %v2272_v57 = vmax.f32 %v2270_v35, %v2271_v54  ;;  %v2291_v59 = vmax.f32 %v2289_v53, %v2290_v56  ;;  %2884 = vmatprep.mubr.msk.f32.mxu1 %vm3422_vm1, %v3421_v0  ;;  %v2923_v17 = vpack.c.bf16 %v2314_v11, %v2313_v50  ;;  %v2316_v0 = vld [vmem:[#allocation20 + $0x18] sm:$0xff]  ;;  %2942 = vmatpush3.bf16.msra.mxu1 %v2941_v55  ;;  %vm2311_vm1 = vcmask 523264  }
0x20dc   :  { %v2926_v20 = vpack.c.bf16 %v2316_v0, %v2315_v5  ;;  %2943 = vmatprep.subr.bf16.mxu1 %v3423_v12 }
0x20dd   :  { %v2273_v16 = vrot.slane %v2272_v57, 2  ;;  %v2292_v13 = vrot.slane %v2291_v59, 2  ;;  %2924 = vmatpush3.bf16.msra.mxu0 %v2923_v17 }
0x20de   :  { %2925 = vmatprep.subr.bf16.mxu0 %v3423_v12 }
0x20df   :  { %v2274_v2 = vmax.f32 %v2272_v57, %v2273_v16  ;;  %v2293_v6 = vmax.f32 %v2291_v59, %v2292_v13  ;;  %2945 = vmatpush3.bf16.msra.mxu1 %v2944_v58 }
0x20e0   :  { %2946 = vmatprep.subr.bf16.mxu1 %v3423_v12 }
0x20e1   :  { %v2275_v42 = vrot.slane %v2274_v2, 1  ;;  %v2294_v34 = vrot.slane %v2293_v6, 1  ;;  %2927 = vmatpush3.bf16.msra.mxu0 %v2926_v20 }
0x20e2   :  { %2928 = vmatprep.subr.bf16.mxu0 %v3423_v12 }
0x20e3   :  { %v2276_v7 = vmax.f32 %v2274_v2, %v2275_v42  ;;  %v2295_v47 = vmax.f32 %v2293_v6, %v2294_v34  ;;  %2948 = vmatpush3.bf16.msra.mxu1 %v2947_v60 }
0x20e5   :  { %v2297_v24 = vsel %vm2296_vm7, %v2276_v7, %v2295_v47  ;;  %2930 = vmatpush3.bf16.msra.mxu0 %v2929_v23 }
0x20e6   :  { %v2301_v4 = vsel %vm2298_vm8, %v2297_v24, 0.0  ;;  %2931 = vmatprep.subr.bf16.mxu0 %v3423_v12 }
0x20e7   :  { %2303 = vrot.lane.b32.xlu1 %v2301_v4, %s3426_s14 }
0x20e9   :  { %2933 = vmatpush3.bf16.msra.mxu0 %v2932_v27 }
0x20ea   :  { %2934 = vmatprep.subr.bf16.mxu0 %v3423_v12 }
0x20ed   :  { %2936 = vmatpush3.bf16.msra.mxu0 %v2935_v33 }
0x20ee   :  { %2937 = vmatprep.subr.bf16.mxu0 %v3423_v12 }
0x20f1   :  { %2939 = vmatpush3.bf16.msra.mxu0 %v2938_v45 }
0x2159   :  { %v2304_v41 = vpop.permute.xlu1 %2303 }
0x21ad   :  { %v2243_v37 = vpop.f32.mrb[42].mxu1 }
0x21ae   :  { %v2844_v38 = vpop.f32.mrb[43].mxu1  ;;  %v2253_v39 = vmul.f32 %v3049_v15, %v2243_v37  ;;  %v2310_v19 = vsel %vm352_vm2, %v2243_v37, %v2304_v41 }
0x21b0   :  { %2307 = vrot.lane.b32.xlu1 %v2253_v39, %s3404_s28  ;;  %s3427_s28 = smov [#allocation26]  }
0x21b1   :  { %s2507_s23 = sshll.u32 %s3427_s28, 4  ;;  %s2508_s23 = int_to_ptr.vmem [resolvable:$true] %s2507_s23 }
0x21b2   :  { %s3363_s8 = scalar_lea.vmem %s2508_s23, 32  ;;  %p3368_p1 = scmp.lt.s32.totalorder %s2508_s23, %s2508_s23 }
0x21b3   :  { %p3364_p0 = scmp.ne.s32.totalorder %s2508_s23, %s3363_s8  ;;  %p3369_p2 = scmp.lt.s32.totalorder %s3363_s8, %s3363_s8 }
0x21b5   :  { %p3370_p3 = por %p3369_p2, %p3368_p1 }
0x21b7   :  { %p3371_p4 = pnand %p3370_p3, %p3364_p0 }
0x2222   :  { %v2308_v62 = vpop.permute.xlu1 %2307 }
0x2223   :  { %v2312_v10 = vsel %vm2311_vm1, %v2310_v19, %v2308_v62 }
0x2224   :  { %2870 = vmatmul.mubr.msk.f32.vlgmr.msra.gmra.mrb[40].mxu0 %vm2332_vm9, %v2312_v10 }
0x22f7   :  { %v2402_v12 = vpop.f32.mrb[40].mxu0 }
0x22f8   :  { %v2403_v44 = vadd.f32 %v2571_v21, %v2402_v12  ;;  %v2871_v8 = vpop.f32.mrb[41].mxu0 }
0x22fa   :  { %vm2406_vm11 = vcmp.gt.f32.partialorder %v2403_v44, 0.0  ;;  %v2407_v28 = vmul.f32 0.01, %v2403_v44 }
0x22fc   :  { %v2408_v31 = vsel %vm2406_vm11, %v2403_v44, %v2407_v28 }
0x22fd   :  { %2885 = vmatmul.mubr.msk.f32.vlgmr.msra.gmra.mrb[44].mxu1 %vm2422_vm12, %v2408_v31 }
0x23d0   :  { %v2492_v51 = vpop.f32.mrb[44].mxu1 }
0x23d1   :  { %v2493_v43 = vadd.f32 %v2573_v40, %v2492_v51  ;;  %v2886_v3 = vpop.f32.mrb[45].mxu1 }
0x23d3   :  { %vm2496_vm2 = vcmp.gt.f32.partialorder %v2493_v43, 0.0  ;;  %v2497_v46 = vmul.f32 0.01, %v2493_v43 }
0x23d5   :  { %v2498_v52 = vsel %vm2496_vm2, %v2493_v43, %v2497_v46 }
0x23d6   :  { %2500 = vst.msk [vmem:[#allocation26] sm:$0x3] %vm2499_vm3, %v2498_v52 }
0x23d7   :  { %3374 = shalt.err (!%p3371_p4)
}
0x23d8   :  { %s4242_s21 = sld [smem:[#allocation36_spill]] }
0x23de   :  { %s3375_s24 = scalar_lea.hbm %s4242_s21, 32 }
0x23df   :  { %p3376_p5 = scmp.ne.s32.totalorder %s4242_s21, %s3375_s24  ;;  %p3379_p6 = scmp.lt.u32.totalorder %s3375_s24, %s4242_s21 }
0x23e1   :  { %p3381_p7 = pnand %p3379_p6, %p3376_p5 }
0x23e3   :  { %3384 = shalt.err (!%p3381_p7)
}
0x23e4   :  { %2510 = dma.vmem_to_hbm [thread:$0]  %s2508_s23, 32, %s4242_s21, [#allocation5]  }
0x23e5   :  { %3401 = dma.done.wait [#allocation5], 32  }
0x23e6   :  { %3402 = vsyncadd [#allocation5], 4294967264 }
0x23e7   :  { %2514 = vsyncpa [#allocation4], 1 }
0x23e8   :  { %2515 = vsyncpa [#allocation7], 1 }
0x23e9   :  { %2516 = vsyncpa [#allocation10], 1 }
0x23ea   :  { %2517 = vsyncpa [#allocation13], 1 }
0x23eb   :  { %2518 = vsyncpa [#allocation16], 1 }
0x23ec   :  { %2519 = vsyncpa [#allocation19], 1 }
0x23ed   :  { %2520 = vsyncpa [#allocation22], 1 }
0x23ee   :  { %2521 = vsyncpa [#allocation25], 1 }
0x23ef   :  { %2522 = vsyncpa [#allocation5], 1 }

</bundles_post_ra>
